<compile_context>
chip_gen: v6e
topology: v6e:2x2x1
jax: 0.10.0
libtpu: 0.0.40
codegen_flags: <defaults>
</compile_context>

<pallas_src>
import functools

import jax
import jax.numpy as jnp
from jax.experimental import pallas as pl
from jax.experimental.pallas import tpu as pltpu

F32 = jnp.float32
BF16 = jnp.bfloat16


def _detect_vmem_limit():
    """Per-kernel VMEM budget: ~48 MiB on v7x, ~112 MiB on v5e/v6e."""
    cap = 64 * 1024 * 1024
    try:
        info = pltpu.get_tpu_info()
        for attr in ("vmem_capacity_bytes", "vmem_bytes", "vmem_capacity"):
            v = getattr(info, attr, None)
            if v:
                cap = int(v)
                break
    except Exception:
        pass
    return int(min(max(cap - 16 * 1024 * 1024, 32 * 1024 * 1024),
                   112 * 1024 * 1024))


_VMEM_LIMIT = _detect_vmem_limit()
_BIG_VMEM = _VMEM_LIMIT >= 96 * 1024 * 1024
_CONV_M_CAP = 4096 if _BIG_VMEM else 2048        # rows per conv matmul step
_FC_TN_CAP = 2048 if _BIG_VMEM else 1024         # FC output-tile cap


def _largest_divisor(n, cap):
    cap = max(1, min(n, cap))
    for d in range(cap, 0, -1):
        if n % d == 0:
            return d
    return 1


def _round_up(x, m):
    return (x + m - 1) // m * m


# ----------------------------------------------------------------------------
# Generic 3x3 "same" conv + bias + ReLU (Cin >= 64), NHWC, bf16 in / bf16 out,
# f32 accumulation in a VMEM scratch ref.
# Grid = (B, H // TH).  The padded image of the current batch element stays
# resident in VMEM (index map ignores h); each grid step computes TH output
# rows as 9 shifted (TH*Wp16, Cin) @ (Cin, Cout) MXU matmuls accumulated into
# acc_ref.  Wp16 = round_up(W, 16) so the (TH, Wp16) collapse is layout-free
# for bf16 (extra columns are zero-padded and sliced away on store).
# ----------------------------------------------------------------------------
@functools.lru_cache(maxsize=None)
def _build_conv3x3_relu(B, H, W, Cin, Cout):
    Wp16 = _round_up(W, 16)
    Wp = Wp16 + 2                      # padded width handed to the kernel
    Hp = H + 2
    TH = _largest_divisor(H, max(1, _CONV_M_CAP // Wp16))
    nH = H // TH
    M = TH * Wp16

    def kernel(x_ref, w_ref, b_ref, o_ref, acc_ref):
        row0 = pl.program_id(1) * TH

        def tap(kh, kw):
            patch = x_ref[pl.ds(row0 + kh, TH), pl.ds(kw, Wp16), :]
            patch = patch.reshape(M, Cin)
            return jnp.dot(patch, w_ref[kh, kw], preferred_element_type=F32)

        acc_ref[...] = tap(0, 0)                 # init with first tap
        for kh in range(3):
            for kw in range(3):
                if kh == 0 and kw == 0:
                    continue
                acc_ref[...] += tap(kh, kw)

        out = jnp.maximum(acc_ref[...] + b_ref[...], 0.0)
        out = out.reshape(TH, Wp16, Cout)
        o_ref[...] = out[:, :W, :].astype(o_ref.dtype)

    call = pl.pallas_call(
        kernel,
        out_shape=jax.ShapeDtypeStruct((B, H, W, Cout), BF16),
        grid=(B, nH),
        in_specs=[
            # full padded image of batch b, resident across all h steps
            pl.BlockSpec((None, Hp, Wp, Cin), lambda b, h: (b, 0, 0, 0)),
            pl.BlockSpec((3, 3, Cin, Cout), lambda b, h: (0, 0, 0, 0)),
            pl.BlockSpec((1, Cout), lambda b, h: (0, 0)),
        ],
        out_specs=pl.BlockSpec((None, TH, W, Cout), lambda b, h: (b, h, 0, 0)),
        scratch_shapes=[pltpu.VMEM((M, Cout), F32)],
        compiler_params=pltpu.CompilerParams(
            dimension_semantics=("parallel", "parallel"),
            vmem_limit_bytes=_VMEM_LIMIT),
    )
    return call, Wp


def conv3x3_relu(x, w_hwio, bias):
    B, H, W, Cin = x.shape
    Cout = w_hwio.shape[-1]
    call, Wp = _build_conv3x3_relu(B, H, W, Cin, Cout)
    # 'same' padding: one zero row top/bottom, one zero column left and
    # (Wp - W - 1) zero columns right (extra columns only pad to 16-alignment).
    x_pad = jnp.pad(x, ((0, 0), (1, 1), (1, Wp - W - 1), (0, 0)))
    return call(x_pad, w_hwio, bias.reshape(1, Cout))


# ----------------------------------------------------------------------------
# conv1 special case (Cin=3): im2col in the wrapper (K = 27) and a plain
# row-tiled matmul + bias + ReLU kernel.  Avoids pushing Cin=3 through the
# channels-on-lanes path (2% lane utilization, huge VMEM inflation).
# ----------------------------------------------------------------------------
@functools.lru_cache(maxsize=None)
def _build_conv1_relu(B, H, W, K, Cout):
    TH = _largest_divisor(H, max(1, _CONV_M_CAP // W))
    nH = H // TH
    M = TH * W

    def kernel(x_ref, w_ref, b_ref, o_ref):
        xt = x_ref[...].reshape(M, K)
        y = jnp.dot(xt, w_ref[...], preferred_element_type=F32)
        y = jnp.maximum(y + b_ref[...], 0.0)
        o_ref[...] = y.reshape(TH, W, Cout).astype(o_ref.dtype)

    return pl.pallas_call(
        kernel,
        out_shape=jax.ShapeDtypeStruct((B, H, W, Cout), BF16),
        grid=(B, nH),
        in_specs=[
            pl.BlockSpec((None, TH, W, K), lambda b, h: (b, h, 0, 0)),
            pl.BlockSpec((K, Cout), lambda b, h: (0, 0)),
            pl.BlockSpec((1, Cout), lambda b, h: (0, 0)),
        ],
        out_specs=pl.BlockSpec((None, TH, W, Cout), lambda b, h: (b, h, 0, 0)),
        compiler_params=pltpu.CompilerParams(
            dimension_semantics=("parallel", "parallel"),
            vmem_limit_bytes=_VMEM_LIMIT),
    )


def conv1_im2col_relu(x, w_hwio, bias):
    B, H, W, Cin = x.shape
    Cout = w_hwio.shape[-1]
    xp = jnp.pad(x, ((0, 0), (1, 1), (1, 1), (0, 0)))
    # (kh, kw, cin) flatten order matches w_hwio.reshape(9*Cin, Cout)
    patches = jnp.concatenate(
        [xp[:, kh:kh + H, kw:kw + W, :] for kh in range(3) for kw in range(3)],
        axis=-1)                                          # (B, H, W, 9*Cin)
    w2d = w_hwio.reshape(9 * Cin, Cout)
    return _build_conv1_relu(B, H, W, 9 * Cin, Cout)(
        patches, w2d, bias.reshape(1, Cout))


# ----------------------------------------------------------------------------
# MaxPool 2x2 stride 2.  Wrapper does a free, contiguity-preserving reshape
# (B,H,W,C)->(B,Ho,2,Wo,2C) so the H-pair sits on a leading dim and the W-pair
# sits in the two lane halves [0:C] / [C:2C].  Input read from HBM once.
# ----------------------------------------------------------------------------
@functools.lru_cache(maxsize=None)
def _build_maxpool(B, Ho, Wo, C):
    TH = _largest_divisor(Ho, max(1, _CONV_M_CAP // max(Wo, 1)))
    nH = Ho // TH

    def kernel(x_ref, o_ref):
        x = x_ref[...]                          # (TH, 2, Wo, 2C)
        r = jnp.maximum(x[:, 0], x[:, 1])       # max over the row pair
        o_ref[...] = jnp.maximum(r[:, :, :C], r[:, :, C:])   # max over col pair

    return pl.pallas_call(
        kernel,
        out_shape=jax.ShapeDtypeStruct((B, Ho, Wo, C), BF16),
        grid=(B, nH),
        in_specs=[pl.BlockSpec((None, TH, 2, Wo, 2 * C),
                               lambda b, h: (b, h, 0, 0, 0))],
        out_specs=pl.BlockSpec((None, TH, Wo, C), lambda b, h: (b, h, 0, 0)),
        compiler_params=pltpu.CompilerParams(
            dimension_semantics=("parallel", "parallel"),
            vmem_limit_bytes=_VMEM_LIMIT),
    )


def maxpool2x2(x):
    B, H, W, C = x.shape
    Ho, Wo = H // 2, W // 2
    x_r = x.reshape(B, Ho, 2, Wo, 2 * C)        # free reshape (row-major view)
    return _build_maxpool(B, Ho, Wo, C)(x_r)


# ----------------------------------------------------------------------------
# Linear (x @ Wt + b) + ReLU, K-tiled with a VMEM f32 accumulator, bf16
# operands.  Optional dropout(p=0.5, training semantics) fused into the
# final-k epilogue (uniform side array comes from jax.random in the wrapper).
# ----------------------------------------------------------------------------
@functools.lru_cache(maxsize=None)
def _build_linear_relu(M, K, N, fuse_dropout, out_dtype):
    tn = _largest_divisor(N, _FC_TN_CAP)
    w_budget = _VMEM_LIMIT // 2
    tk_cap = max(128, w_budget // (2 * 2 * tn))   # bf16 weight, double buffered
    tk = _largest_divisor(K, tk_cap)
    assert K % tk == 0 and N % tn == 0
    assert tk == K or tk % 128 == 0

    def kernel(*refs):
        if fuse_dropout:
            x_ref, w_ref, b_ref, u_ref, o_ref, acc_ref = refs
        else:
            x_ref, w_ref, b_ref, o_ref, acc_ref = refs
        k = pl.program_id(1)

        @pl.when(k == 0)
        def _():
            acc_ref[...] = jnp.zeros_like(acc_ref)

        acc_ref[...] += jnp.dot(x_ref[...], w_ref[...],
                                preferred_element_type=F32)

        @pl.when(k == pl.num_programs(1) - 1)
        def _():
            y = jnp.maximum(acc_ref[...] + b_ref[...], 0.0)
            if fuse_dropout:
                keep = u_ref[...] >= 0.5
                y = jnp.where(keep, y * 2.0, jnp.zeros_like(y))
            o_ref[...] = y.astype(o_ref.dtype)

    in_specs = [pl.BlockSpec((M, tk), lambda i, k: (0, k)),
                pl.BlockSpec((tk, tn), lambda i, k: (k, i)),
                pl.BlockSpec((1, tn), lambda i, k: (0, i))]
    if fuse_dropout:
        in_specs.append(pl.BlockSpec((M, tn), lambda i, k: (0, i)))

    return pl.pallas_call(
        kernel,
        out_shape=jax.ShapeDtypeStruct((M, N), out_dtype),
        grid=(N // tn, K // tk),
        in_specs=in_specs,
        out_specs=pl.BlockSpec((M, tn), lambda i, k: (0, i)),
        scratch_shapes=[pltpu.VMEM((M, tn), F32)],
        compiler_params=pltpu.CompilerParams(
            dimension_semantics=("parallel", "arbitrary"),
            vmem_limit_bytes=_VMEM_LIMIT),
    )


def linear_relu(x, wt, bias, *, dropout_u=None, out_dtype=BF16):
    M, K = x.shape
    N = wt.shape[1]
    call = _build_linear_relu(M, K, N, dropout_u is not None, out_dtype)
    args = (x, wt, bias.reshape(1, N))
    if dropout_u is not None:
        args = args + (dropout_u,)
    return call(*args)


# ----------------------------------------------------------------------------
# Parameters (deterministic, He-style init; conv weights HWIO bf16, linear
# weights (in, out) bf16, biases f32).
# ----------------------------------------------------------------------------
def init_params(key):
    params = {}
    conv_defs = [("conv1", 3, 64), ("conv2", 64, 64), ("conv3", 64, 128),
                 ("conv4", 128, 128), ("conv5", 128, 256), ("conv6", 256, 256),
                 ("conv7", 256, 512), ("conv8", 512, 512)]
    for i, (name, cin, cout) in enumerate(conv_defs):
        k = jax.random.fold_in(key, i)
        w = (jax.random.normal(k, (3, 3, cin, cout), F32)
             * jnp.sqrt(2.0 / (9 * cin)))
        params[name + "_w"] = w.astype(BF16)
        params[name + "_b"] = jnp.zeros((cout,), F32)
    fc_defs = [("fc1", 512 * 7 * 7, 4096), ("fc2", 4096, 4096), ("fc3", 4096, 5)]
    for j, (name, fin, fout) in enumerate(fc_defs):
        k = jax.random.fold_in(key, 100 + j)
        w = jax.random.normal(k, (fin, fout), F32) * jnp.sqrt(2.0 / fin)
        params[name + "_w"] = w.astype(BF16)
        params[name + "_b"] = jnp.zeros((fout,), F32)
    return params


# ----------------------------------------------------------------------------
# Forward pass mirroring VGG19_model.forward exactly (including repeated use
# of conv6/conv8, training-mode dropout, and the final ReLU after full3).
# ----------------------------------------------------------------------------
def vgg19_forward(x_nchw, params, dropout_seed=0):
    p = params
    x = jnp.transpose(x_nchw, (0, 2, 3, 1)).astype(BF16)    # NCHW -> NHWC

    x = conv1_im2col_relu(x, p["conv1_w"], p["conv1_b"])
    x = conv3x3_relu(x, p["conv2_w"], p["conv2_b"])
    x = maxpool2x2(x)
    x = conv3x3_relu(x, p["conv3_w"], p["conv3_b"])
    x = conv3x3_relu(x, p["conv4_w"], p["conv4_b"])
    x = maxpool2x2(x)
    x = conv3x3_relu(x, p["conv5_w"], p["conv5_b"])
    x = conv3x3_relu(x, p["conv6_w"], p["conv6_b"])
    x = conv3x3_relu(x, p["conv6_w"], p["conv6_b"])
    x = maxpool2x2(x)
    x = conv3x3_relu(x, p["conv7_w"], p["conv7_b"])
    x = conv3x3_relu(x, p["conv8_w"], p["conv8_b"])
    x = conv3x3_relu(x, p["conv8_w"], p["conv8_b"])
    x = maxpool2x2(x)
    x = conv3x3_relu(x, p["conv8_w"], p["conv8_b"])
    x = conv3x3_relu(x, p["conv8_w"], p["conv8_b"])
    x = conv3x3_relu(x, p["conv8_w"], p["conv8_b"])
    x = maxpool2x2(x)                                       # (B, 7, 7, 512)

    # torch: x.view(-1, 512*7*7) on an NCHW tensor -> flatten in (C, H, W) order
    x = jnp.transpose(x, (0, 3, 1, 2)).reshape(-1, 512 * 7 * 7)

    key = jax.random.PRNGKey(dropout_seed)
    B = x.shape[0]
    u1 = jax.random.uniform(jax.random.fold_in(key, 0), (B, 4096), F32)
    u2 = jax.random.uniform(jax.random.fold_in(key, 1), (B, 4096), F32)

    x = linear_relu(x, p["fc1_w"], p["fc1_b"], dropout_u=u1, out_dtype=BF16)
    x = linear_relu(x, p["fc2_w"], p["fc2_b"], dropout_u=u2, out_dtype=BF16)

    # fc3: pad N=5 -> 128 for a lane-dense store, slice the 5 logits afterwards.
    w3 = jnp.pad(p["fc3_w"], ((0, 0), (0, 128 - 5)))
    b3 = jnp.pad(p["fc3_b"], ((0, 128 - 5),))
    x = linear_relu(x, w3, b3, dropout_u=None, out_dtype=F32)
    return x[:, :5]


if __name__ == "__main__":
    key = jax.random.PRNGKey(0)
    params = init_params(key)
    # 224x224 input is implied by the 512*7*7 flatten (5 maxpools of stride 2).
    x = jax.random.normal(jax.random.fold_in(key, 999), (2, 3, 224, 224), F32)
    out = vgg19_forward(x, params, dropout_seed=0)
    out = jax.block_until_ready(out)
    assert out.shape == (2, 5), out.shape
    assert bool(jnp.all(jnp.isfinite(out)))
    print("KERNEL_OK")
</pallas_src>

<mosaic_0001>
module attributes {stable_mosaic.version = 11 : i64} {
  func.func @kernel(%arg0: i32, %arg1: i32, %arg2: memref<1x8x224x27xbf16, #tpu.memory_space<vmem>>, %arg3: memref<27x64xbf16, #tpu.memory_space<vmem>>, %arg4: memref<1x64xf32, #tpu.memory_space<vmem>>, %arg5: memref<1x8x224x64xbf16, #tpu.memory_space<vmem>>) attributes {dimension_semantics = [#tpu.dimension_semantics<parallel>, #tpu.dimension_semantics<parallel>], iteration_bounds = array<i64: 2, 28>, scalar_prefetch = 0 : i64, scratch_operands = 0 : i64, tpu.core_type = #tpu.core_type<tc>, window_params = [{transform_indices = @transform_0, window_bounds = array<i64: 1, 8, 224, 27>}, {pipeline_mode = #tpu.pipeline_mode<synchronous>, transform_indices = @transform_1, window_bounds = array<i64: 27, 64>}, {pipeline_mode = #tpu.pipeline_mode<synchronous>, transform_indices = @transform_2, window_bounds = array<i64: 1, 64>}, {transform_indices = @transform_3, window_bounds = array<i64: 1, 8, 224, 64>}]} {
    %c0 = arith.constant 0 : index
    %c0_0 = arith.constant 0 : index
    %c0_1 = arith.constant 0 : index
    %c0_2 = arith.constant 0 : index
    %0 = vector.load %arg2[%c0, %c0_0, %c0_1, %c0_2] : memref<1x8x224x27xbf16, #tpu.memory_space<vmem>>, vector<1x8x224x27xbf16>
    %1 = vector.shape_cast %0 : vector<1x8x224x27xbf16> to vector<8x224x27xbf16>
    %2 = vector.shape_cast %1 : vector<8x224x27xbf16> to vector<1792x27xbf16>
    %c0_3 = arith.constant 0 : index
    %c0_4 = arith.constant 0 : index
    %3 = vector.load %arg3[%c0_3, %c0_4] : memref<27x64xbf16, #tpu.memory_space<vmem>>, vector<27x64xbf16>
    %cst = arith.constant dense<0.000000e+00> : vector<1792x64xf32>
    %4 = tpu.matmul %2, %3, %cst {dimension_numbers = #tpu.dot_dimension_numbers<[1], [0], [0], [1], [0, 0, 1, 1], [], []>} : vector<1792x27xbf16>, vector<27x64xbf16>, vector<1792x64xf32> -> vector<1792x64xf32>
    %c0_5 = arith.constant 0 : index
    %c0_6 = arith.constant 0 : index
    %5 = vector.load %arg4[%c0_5, %c0_6] : memref<1x64xf32, #tpu.memory_space<vmem>>, vector<1x64xf32>
    %6 = vector.broadcast %5 : vector<1x64xf32> to vector<1792x64xf32>
    %7 = arith.addf %4, %6 : vector<1792x64xf32>
    %cst_7 = arith.constant 0.000000e+00 : f32
    %8 = vector.broadcast %cst_7 : f32 to vector<1792x64xf32>
    %9 = arith.maximumf %7, %8 : vector<1792x64xf32>
    %10 = vector.shape_cast %9 : vector<1792x64xf32> to vector<8x224x64xf32>
    %11 = arith.truncf %10 : vector<8x224x64xf32> to vector<8x224x64xbf16>
    %c0_8 = arith.constant 0 : index
    %c0_9 = arith.constant 0 : index
    %c0_10 = arith.constant 0 : index
    %c0_11 = arith.constant 0 : index
    %12 = vector.load %arg5[%c0_8, %c0_9, %c0_10, %c0_11] : memref<1x8x224x64xbf16, #tpu.memory_space<vmem>>, vector<1x8x224x64xbf16>
    %13 = vector.shape_cast %12 : vector<1x8x224x64xbf16> to vector<8x224x64xbf16>
    %14 = vector.shape_cast %11 : vector<8x224x64xbf16> to vector<1x8x224x64xbf16>
    tpu.vector_store %arg5[%c0_8, %c0_9, %c0_10, %c0_11], %14 {strides = array<i32>} : memref<1x8x224x64xbf16, #tpu.memory_space<vmem>>, vector<1x8x224x64xbf16>,
    return
  }
  func.func @transform_0(%arg0: i32, %arg1: i32) -> (i32, i32, i32, i32) {
    %c0_i32 = arith.constant 0 : i32
    %c0_i32_0 = arith.constant 0 : i32
    %c0_i32_1 = arith.constant 0 : i32
    return %arg0, %arg1, %c0_i32, %c0_i32_0 : i32, i32, i32, i32
  }
  func.func @transform_1(%arg0: i32, %arg1: i32) -> (i32, i32) {
    %c0_i32 = arith.constant 0 : i32
    %c0_i32_0 = arith.constant 0 : i32
    %c0_i32_1 = arith.constant 0 : i32
    return %c0_i32, %c0_i32_0 : i32, i32
  }
  func.func @transform_2(%arg0: i32, %arg1: i32) -> (i32, i32) {
    %c0_i32 = arith.constant 0 : i32
    %c0_i32_0 = arith.constant 0 : i32
    %c0_i32_1 = arith.constant 0 : i32
    return %c0_i32, %c0_i32_0 : i32, i32
  }
  func.func @transform_3(%arg0: i32, %arg1: i32) -> (i32, i32, i32, i32) {
    %c0_i32 = arith.constant 0 : i32
    %c0_i32_0 = arith.constant 0 : i32
    %c0_i32_1 = arith.constant 0 : i32
    return %arg0, %arg1, %c0_i32, %c0_i32_0 : i32, i32, i32, i32
  }
}

</mosaic_0001>

<bundles_post_ra>
// kernel: tpu_custom_call.1
= control target key start
LH: loop header
LB: loop body
LE: loop exit
PB: predicated region body
PF: predicated region fallthrough
CT: control target
= control target key end

     0   :  { %s4991_s12 = smov 0   ;;  %s4993_s13 = smov 0   ;;  %s5970_s0 = inlined_call_operand.vmem [shape: bf16[2,224,224,27], index: 0, kind: input, shape index: {}]   ;;  %s5971_s1 = inlined_call_operand.vmem [shape: bf16[27,64], index: 1, kind: input, shape index: {}]   ;;  %s5972_s2 = inlined_call_operand.vmem [shape: f32[1,64], index: 2, kind: input, shape index: {}]   ;;  %s5973_s3 = inlined_call_operand.vmem [shape: bf16[2,224,224,64], index: 3, kind: output, shape index: {}]  }
   0x1   :  { %s4995_s14 = smov 0   ;;  %s4997_s15 = smov 0  }
   0x2   :  { %s4999_s16 = smov 0  }
   0x3 LB: > { %s22_s17 = sadd.s32 1, %s4960_s14  ;;  %s25_s18 = sadd.s32 1, %s4964_s15  ;;  %s4968_s16 = sphi %s4999_s16, %s13_s16   ;;  %s4964_s15 = sphi %s4997_s15, %s5977_s15   ;;  %s4960_s14 = sphi %s4995_s14, %s5976_s14   ;;  %s4956_s13 = sphi %s4993_s13, %s5975_s13   ;;  %s4952_s12 = sphi %s4991_s12, %s5974_s12  }
   0x4   : > { %p23_p0 = scmp.ge.s32.totalorder %s22_s17, 28  ;;  %p3743_p1 = scmp.ge.s32.totalorder %s4968_s16, 1 }
   0x5   : > { %p159_p2 = scmp.lt.s32.totalorder %s4968_s16, 57 }
   0x6   : > { %s5979_s17 = smov (%p23_p0, %s22_s17), 0  ;;  %s5981_s18 = smov (!%p23_p0, %s25_s18), %s4964_s15 }
   0x7   : > { %p160_p3 = pnand %p3743_p1, %p159_p2  ;;  %p27_p4 = scmp.ge.s32.totalorder %s5981_s18, 2 }
   0x8   : > { %s3744_s21 = sshll.u32 (!%p160_p3), %s4952_s12, 3  ;;  %p194_p5 = scmp.lt.s32.totalorder (!%p160_p3), %s4956_s13, 1 }
   0x9   : > { %s5983_s18 = smov (%p27_p4, %s5981_s18), 0  ;;  %163 = sbr.rel (%p160_p3) target bundleno = 449 (0x1c1), region = 32 }
   0xa   : > { %p196_p6 = scmp.lt.s32.totalorder (!%p160_p3), %s3744_s21, 223 }
   0xe   : > { %v4814_v0 = vld [vmem:[%s5971_s1 + $0x8] sm:$0x3f]   ;;  %vm1359_vm0 = vcmask 1044480   ;;  %vm1360_vm1 = vcmask 1045504   ;;  %v4970_v1 = vmov 65535   ;;  %v4815_v5 = vld [vmem:[%s5971_s1] sm:$0xff]  }
   0xf   : > { %v1361_v2 = vsel %vm1359_vm0, 4294967295, %v4970_v1  ;;  %s5985_s13 = smov (!%p194_p5, %s4956_s13), 1  ;;  %s5987_s21 = smov (!%p196_p6, %s3744_s21), 223  ;;  %vm1022_vm2 = vcmask 220160   ;;  %vm3415_vm3 = vcmask 519168  }
  0x10   : > { %v1362_v3 = vsel %vm1360_vm1, %v1361_v2, 0  ;;  %s4772_s24 = smul.u32 6272, %s5985_s13 }
  0x11   : > { %v1364_v4 = vand.u32 %v4814_v0, %v1362_v3  ;;  %s4771_s25 = smul.u32 28, %s5987_s21 }
  0x13   : > { %4539 = vmatprep.subr.bf16.mxu0 %v1364_v4  ;;  %4767 = vmatprep.subr.bf16.mxu1 %v1364_v4  ;;  %s5027_s26 = sadd.s32 %s4772_s24, %s4771_s25 }
  0x14   : > { %4540 = vmatpush3.bf16.msra.mxu0 %v1364_v4  ;;  %4769 = vmatpush3.bf16.msra.mxu1 %v1364_v4  ;;  %s3745_s27 = sshll.u32 %s5027_s26, 2 }
  0x15   : > { %4541 = vmatprep.subr.bf16.mxu0 %v4815_v5  ;;  %4768 = vmatprep.subr.bf16.mxu1 %v4815_v5  ;;  %s5035_s30 = scalar_lea.vmem %s5970_s0, %s3745_s27  ;;  %s5254_s8 = scalar_lea.vmem %s5973_s3, %s3745_s27 }
  0x16   : > { %v4816_v6 = vld [vmem:[%s5035_s30] sm:$0xff]   ;;  %v4818_v8 = vld [vmem:[%s5035_s30 + $0x8] sm:$0xff]   ;;  %v4820_v10 = vld [vmem:[%s5035_s30 + $0x10] sm:$0xff]  }
  0x17   : > { %v4817_v7 = vld [vmem:[%s5035_s30 + $0x1c0] sm:$0xff]   ;;  %4543 = vmatprep.mubr.msk.bf16.mxu0 %vm1022_vm2, %v4816_v6  ;;  %v4819_v9 = vld [vmem:[%s5035_s30 + $0x1c8] sm:$0xff]   ;;  %v4821_v11 = vld [vmem:[%s5035_s30 + $0x1d0] sm:$0xff]  }
  0x18   : > { %4542 = vmatpush3.bf16.msra.mxu0 %v4815_v5  ;;  %4770 = vmatpush3.bf16.msra.mxu1 %v4815_v5  ;;  %v4822_v12 = vld [vmem:[%s5035_s30 + $0x18] sm:$0xff]   ;;  %v4824_v14 = vld [vmem:[%s5035_s30 + $0x20] sm:$0xff]   ;;  %v4826_v16 = vld [vmem:[%s5035_s30 + $0x28] sm:$0xff]  }
  0x19   : > { %4655 = vmatprep.mubr.msk.bf16.mxu1 %vm1022_vm2, %v4817_v7  ;;  %v4823_v13 = vld [vmem:[%s5035_s30 + $0x1d8] sm:$0xff]   ;;  %v4825_v15 = vld [vmem:[%s5035_s30 + $0x1e0] sm:$0xff]   ;;  %v4827_v17 = vld [vmem:[%s5035_s30 + $0x1e8] sm:$0xff]  }
  0x1a   : > { %v4828_v18 = vld [vmem:[%s5035_s30 + $0x30] sm:$0xff]   ;;  %v4830_v20 = vld [vmem:[%s5035_s30 + $0x38] sm:$0xff]   ;;  %v4832_v22 = vld [vmem:[%s5035_s30 + $0x40] sm:$0xff]  }
  0x1b   : > { %4544 = vmatmul.mubr.msk.bf16.vlgmr.msra.gmra.mxu0 %vm1022_vm2, %v4818_v8  ;;  %4656 = vmatmul.mubr.msk.bf16.vlgmr.msra.gmra.mxu1 %vm1022_vm2, %v4819_v9  ;;  %v4829_v19 = vld [vmem:[%s5035_s30 + $0x1f0] sm:$0xff]   ;;  %v4831_v21 = vld [vmem:[%s5035_s30 + $0x1f8] sm:$0xff]   ;;  %v4833_v23 = vld [vmem:[%s5035_s30 + $0x200] sm:$0xff]  }
  0x1c   : > { %4547 = vmatprep.mubr.msk.bf16.mxu0 %vm1022_vm2, %v4820_v10  ;;  %4659 = vmatprep.mubr.msk.bf16.mxu1 %vm1022_vm2, %v4821_v11  ;;  %v4834_v24 = vld [vmem:[%s5035_s30 + $0x48] sm:$0xff]   ;;  %v4836_v26 = vld [vmem:[%s5035_s30 + $0x50] sm:$0xff]   ;;  %v4838_v28 = vld [vmem:[%s5035_s30 + $0x58] sm:$0xff]  }
  0x1d   : > { %v4835_v25 = vld [vmem:[%s5035_s30 + $0x208] sm:$0xff]   ;;  %v4837_v27 = vld [vmem:[%s5035_s30 + $0x210] sm:$0xff]   ;;  %v4839_v29 = vld [vmem:[%s5035_s30 + $0x218] sm:$0xff]  }
  0x1e   : > { %v4840_v30 = vld [vmem:[%s5035_s30 + $0x60] sm:$0xff]   ;;  %v4842_v32 = vld [vmem:[%s5035_s30 + $0x68] sm:$0xff]   ;;  %v4844_v34 = vld [vmem:[%s5035_s30 + $0x70] sm:$0xff]  }
  0x1f   : > { %v4841_v31 = vld [vmem:[%s5035_s30 + $0x220] sm:$0xff]   ;;  %v4843_v33 = vld [vmem:[%s5035_s30 + $0x228] sm:$0xff]   ;;  %v4845_v35 = vld [vmem:[%s5035_s30 + $0x230] sm:$0xff]  }
  0x20   : > { %v4846_v36 = vld [vmem:[%s5035_s30 + $0x78] sm:$0xff]   ;;  %v4848_v38 = vld [vmem:[%s5035_s30 + $0x80] sm:$0xff]   ;;  %v4850_v40 = vld [vmem:[%s5035_s30 + $0x88] sm:$0xff]  }
  0x21   : > { %v4847_v37 = vld [vmem:[%s5035_s30 + $0x238] sm:$0xff]   ;;  %v4849_v39 = vld [vmem:[%s5035_s30 + $0x240] sm:$0xff]   ;;  %v4851_v41 = vld [vmem:[%s5035_s30 + $0x248] sm:$0xff]  }
  0x22   : > { %v4852_v42 = vld [vmem:[%s5035_s30 + $0x90] sm:$0xff]   ;;  %v4854_v44 = vld [vmem:[%s5035_s30 + $0x98] sm:$0xff]   ;;  %v4856_v46 = vld [vmem:[%s5035_s30 + $0xa0] sm:$0xff]  }
  0x23   : > { %4548 = vmatmul.mubr.msk.bf16.gmra.mxu0 %vm1022_vm2, %v4822_v12  ;;  %4660 = vmatmul.mubr.msk.bf16.gmra.mxu1 %vm1022_vm2, %v4823_v13  ;;  %v4853_v43 = vld [vmem:[%s5035_s30 + $0x250] sm:$0xff]   ;;  %v4855_v45 = vld [vmem:[%s5035_s30 + $0x258] sm:$0xff]   ;;  %v4857_v47 = vld [vmem:[%s5035_s30 + $0x260] sm:$0xff]  }
  0x24   : > { %4551 = vmatprep.mubr.msk.bf16.mxu0 %vm1022_vm2, %v4824_v14  ;;  %4663 = vmatprep.mubr.msk.bf16.mxu1 %vm1022_vm2, %v4825_v15  ;;  %v4858_v48 = vld [vmem:[%s5035_s30 + $0xa8] sm:$0xff]   ;;  %v4860_v50 = vld [vmem:[%s5035_s30 + $0xb0] sm:$0xff]   ;;  %v4862_v52 = vld [vmem:[%s5035_s30 + $0xb8] sm:$0xff]  }
  0x25   : > { %v4859_v49 = vld [vmem:[%s5035_s30 + $0x268] sm:$0xff]   ;;  %v4861_v51 = vld [vmem:[%s5035_s30 + $0x270] sm:$0xff]   ;;  %v4863_v53 = vld [vmem:[%s5035_s30 + $0x278] sm:$0xff]  }
  0x26   : > { %v4864_v54 = vld [vmem:[%s5035_s30 + $0xc0] sm:$0xff]   ;;  %v4866_v56 = vld [vmem:[%s5035_s30 + $0xc8] sm:$0xff]   ;;  %v4868_v58 = vld [vmem:[%s5035_s30 + $0xd0] sm:$0xff]  }
  0x27   : > { %v4865_v55 = vld [vmem:[%s5035_s30 + $0x280] sm:$0xff]   ;;  %v4867_v57 = vld [vmem:[%s5035_s30 + $0x288] sm:$0xff]   ;;  %v4869_v59 = vld [vmem:[%s5035_s30 + $0x290] sm:$0xff]  }
  0x28   : > { %v4870_v60 = vld [vmem:[%s5035_s30 + $0xd8] sm:$0xff]   ;;  %v4872_v62 = vld [vmem:[%s5035_s30 + $0xe0] sm:$0xff]   ;;  %v4874_v0 = vld [vmem:[%s5035_s30 + $0xe8] sm:$0xff]  }
  0x29   : > { %v4871_v61 = vld [vmem:[%s5035_s30 + $0x298] sm:$0xff]   ;;  %v4873_v63 = vld [vmem:[%s5035_s30 + $0x2a0] sm:$0xff]   ;;  %v4875_v1 = vld [vmem:[%s5035_s30 + $0x2a8] sm:$0xff]  }
  0x2a   : > { %v4876_v2 = vld [vmem:[%s5035_s30 + $0xf0] sm:$0xff]   ;;  %v4878_v4 = vld [vmem:[%s5035_s30 + $0xf8] sm:$0xff]   ;;  %v4880_v6 = vld [vmem:[%s5035_s30 + $0x100] sm:$0xff]  }
  0x2b   : > { %4552 = vmatmul.mubr.msk.bf16.gmra.mxu0 %vm1022_vm2, %v4826_v16  ;;  %4664 = vmatmul.mubr.msk.bf16.gmra.mxu1 %vm1022_vm2, %v4827_v17  ;;  %v4877_v3 = vld [vmem:[%s5035_s30 + $0x2b0] sm:$0xff]   ;;  %v4879_v5 = vld [vmem:[%s5035_s30 + $0x2b8] sm:$0xff]   ;;  %v4881_v7 = vld [vmem:[%s5035_s30 + $0x2c0] sm:$0xff]  }
  0x2c   : > { %4555 = vmatprep.mubr.msk.bf16.mxu0 %vm1022_vm2, %v4828_v18  ;;  %4667 = vmatprep.mubr.msk.bf16.mxu1 %vm1022_vm2, %v4829_v19  ;;  %v4882_v8 = vld [vmem:[%s5035_s30 + $0x108] sm:$0xff]   ;;  %v4884_v10 = vld [vmem:[%s5035_s30 + $0x110] sm:$0xff]   ;;  %v4886_v12 = vld [vmem:[%s5035_s30 + $0x118] sm:$0xff]  }
  0x2d   : > { %v4883_v9 = vld [vmem:[%s5035_s30 + $0x2c8] sm:$0xff]   ;;  %v4885_v11 = vld [vmem:[%s5035_s30 + $0x2d0] sm:$0xff]   ;;  %v4887_v13 = vld [vmem:[%s5035_s30 + $0x2d8] sm:$0xff]  }
  0x2e   : > { %v4888_v14 = vld [vmem:[%s5035_s30 + $0x120] sm:$0xff]   ;;  %v4890_v16 = vld [vmem:[%s5035_s30 + $0x128] sm:$0xff]   ;;  %v4892_v18 = vld [vmem:[%s5035_s30 + $0x130] sm:$0xff]  }
  0x2f   : > { %v4889_v15 = vld [vmem:[%s5035_s30 + $0x2e0] sm:$0xff]   ;;  %v4891_v17 = vld [vmem:[%s5035_s30 + $0x2e8] sm:$0xff]   ;;  %v4893_v19 = vld [vmem:[%s5035_s30 + $0x2f0] sm:$0xff]  }
  0x33   : > { %4556 = vmatmul.mubr.msk.bf16.gmra.mxu0 %vm1022_vm2, %v4830_v20  ;;  %4668 = vmatmul.mubr.msk.bf16.gmra.mxu1 %vm1022_vm2, %v4831_v21  ;;  %v4894_v20 = vld [vmem:[%s5035_s30 + $0x138] sm:$0xff]  }
  0x34   : > { %4559 = vmatprep.mubr.msk.bf16.mxu0 %vm1022_vm2, %v4832_v22  ;;  %4671 = vmatprep.mubr.msk.bf16.mxu1 %vm1022_vm2, %v4833_v23  ;;  %v4895_v21 = vld [vmem:[%s5035_s30 + $0x2f8] sm:$0xff]   ;;  %v4896_v22 = vld [vmem:[%s5035_s30 + $0x140] sm:$0xff]  }
  0x35   : > { %v4897_v23 = vld [vmem:[%s5035_s30 + $0x300] sm:$0xff]  }
  0x3b   : > { %4560 = vmatmul.mubr.msk.bf16.gmra.mxu0 %vm1022_vm2, %v4834_v24  ;;  %4672 = vmatmul.mubr.msk.bf16.gmra.mxu1 %vm1022_vm2, %v4835_v25  ;;  %v4898_v24 = vld [vmem:[%s5035_s30 + $0x148] sm:$0xff]  }
  0x3c   : > { %4563 = vmatprep.mubr.msk.bf16.mxu0 %vm1022_vm2, %v4836_v26  ;;  %4675 = vmatprep.mubr.msk.bf16.mxu1 %vm1022_vm2, %v4837_v27  ;;  %v4899_v25 = vld [vmem:[%s5035_s30 + $0x308] sm:$0xff]   ;;  %v4900_v26 = vld [vmem:[%s5035_s30 + $0x150] sm:$0xff]  }
  0x3d   : > { %v4901_v27 = vld [vmem:[%s5035_s30 + $0x310] sm:$0xff]  }
  0x43   : > { %4564 = vmatmul.mubr.msk.bf16.gmra.mxu0 %vm1022_vm2, %v4838_v28  ;;  %4676 = vmatmul.mubr.msk.bf16.gmra.mxu1 %vm1022_vm2, %v4839_v29  ;;  %v4902_v28 = vld [vmem:[%s5035_s30 + $0x158] sm:$0xff]  }
  0x44   : > { %4567 = vmatprep.mubr.msk.bf16.mxu0 %vm1022_vm2, %v4840_v30  ;;  %4679 = vmatprep.mubr.msk.bf16.mxu1 %vm1022_vm2, %v4841_v31  ;;  %v4903_v29 = vld [vmem:[%s5035_s30 + $0x318] sm:$0xff]   ;;  %v4904_v30 = vld [vmem:[%s5035_s30 + $0x160] sm:$0xff]  }
  0x45   : > { %v4905_v31 = vld [vmem:[%s5035_s30 + $0x320] sm:$0xff]  }
  0x4b   : > { %4568 = vmatmul.mubr.msk.bf16.gmra.mxu0 %vm1022_vm2, %v4842_v32  ;;  %4680 = vmatmul.mubr.msk.bf16.gmra.mxu1 %vm1022_vm2, %v4843_v33  ;;  %v4906_v32 = vld [vmem:[%s5035_s30 + $0x168] sm:$0xff]  }
  0x4c   : > { %4571 = vmatprep.mubr.msk.bf16.mxu0 %vm1022_vm2, %v4844_v34  ;;  %4683 = vmatprep.mubr.msk.bf16.mxu1 %vm1022_vm2, %v4845_v35  ;;  %v4907_v33 = vld [vmem:[%s5035_s30 + $0x328] sm:$0xff]   ;;  %v4908_v34 = vld [vmem:[%s5035_s30 + $0x170] sm:$0xff]  }
  0x4d   : > { %v4909_v35 = vld [vmem:[%s5035_s30 + $0x330] sm:$0xff]  }
  0x53   : > { %4572 = vmatmul.mubr.msk.bf16.gmra.mxu0 %vm1022_vm2, %v4846_v36  ;;  %4684 = vmatmul.mubr.msk.bf16.gmra.mxu1 %vm1022_vm2, %v4847_v37  ;;  %v4910_v36 = vld [vmem:[%s5035_s30 + $0x178] sm:$0xff]  }
  0x54   : > { %4575 = vmatprep.mubr.msk.bf16.mxu0 %vm1022_vm2, %v4848_v38  ;;  %4687 = vmatprep.mubr.msk.bf16.mxu1 %vm1022_vm2, %v4849_v39  ;;  %v4911_v37 = vld [vmem:[%s5035_s30 + $0x338] sm:$0xff]   ;;  %v4912_v38 = vld [vmem:[%s5035_s30 + $0x180] sm:$0xff]  }
  0x55   : > { %v4913_v39 = vld [vmem:[%s5035_s30 + $0x340] sm:$0xff]  }
  0x5b   : > { %4576 = vmatmul.mubr.msk.bf16.gmra.mxu0 %vm1022_vm2, %v4850_v40  ;;  %4688 = vmatmul.mubr.msk.bf16.gmra.mxu1 %vm1022_vm2, %v4851_v41  ;;  %v4914_v40 = vld [vmem:[%s5035_s30 + $0x188] sm:$0xff]  }
  0x5c   : > { %4579 = vmatprep.mubr.msk.bf16.mxu0 %vm1022_vm2, %v4852_v42  ;;  %4691 = vmatprep.mubr.msk.bf16.mxu1 %vm1022_vm2, %v4853_v43  ;;  %v4915_v41 = vld [vmem:[%s5035_s30 + $0x348] sm:$0xff]   ;;  %v4916_v42 = vld [vmem:[%s5035_s30 + $0x190] sm:$0xff]   ;;  %v5239_v43 = vld [vmem:[%s5972_s2] ss:$0 sm:$0xff] }
  0x63   : > { %4580 = vmatmul.mubr.msk.bf16.gmra.mxu0 %vm1022_vm2, %v4854_v44  ;;  %4692 = vmatmul.mubr.msk.bf16.gmra.mxu1 %vm1022_vm2, %v4855_v45  ;;  %v4917_v44 = vld [vmem:[%s5035_s30 + $0x350] sm:$0xff]  }
  0x64   : > { %4583 = vmatprep.mubr.msk.bf16.mxu0 %vm1022_vm2, %v4856_v46  ;;  %4695 = vmatprep.mubr.msk.bf16.mxu1 %vm1022_vm2, %v4857_v47 }
  0x6b   : > { %4584 = vmatmul.mubr.msk.bf16.gmra.mxu0 %vm1022_vm2, %v4858_v48  ;;  %4696 = vmatmul.mubr.msk.bf16.gmra.mxu1 %vm1022_vm2, %v4859_v49 }
  0x6c   : > { %4587 = vmatprep.mubr.msk.bf16.mxu0 %vm1022_vm2, %v4860_v50  ;;  %4699 = vmatprep.mubr.msk.bf16.mxu1 %vm1022_vm2, %v4861_v51 }
  0x73   : > { %4588 = vmatmul.mubr.msk.bf16.gmra.mxu0 %vm1022_vm2, %v4862_v52  ;;  %4700 = vmatmul.mubr.msk.bf16.gmra.mxu1 %vm1022_vm2, %v4863_v53 }
  0x74   : > { %4591 = vmatprep.mubr.msk.bf16.mxu0 %vm1022_vm2, %v4864_v54  ;;  %4703 = vmatprep.mubr.msk.bf16.mxu1 %vm1022_vm2, %v4865_v55 }
  0x7b   : > { %4592 = vmatmul.mubr.msk.bf16.gmra.mxu0 %vm1022_vm2, %v4866_v56  ;;  %4704 = vmatmul.mubr.msk.bf16.gmra.mxu1 %vm1022_vm2, %v4867_v57  ;;  %v4918_v56 = vld [vmem:[%s5035_s30 + $0x198] sm:$0xff]  }
  0x7c   : > { %4595 = vmatprep.mubr.msk.bf16.mxu0 %vm1022_vm2, %v4868_v58  ;;  %4707 = vmatprep.mubr.msk.bf16.mxu1 %vm1022_vm2, %v4869_v59 }
  0x83   : > { %4596 = vmatmul.mubr.msk.bf16.gmra.mxu0 %vm1022_vm2, %v4870_v60  ;;  %4708 = vmatmul.mubr.msk.bf16.gmra.mxu1 %vm1022_vm2, %v4871_v61  ;;  %v4919_v61 = vld [vmem:[%s5035_s30 + $0x358] sm:$0xff]  }
  0x84   : > { %4599 = vmatprep.mubr.msk.bf16.mxu0 %vm1022_vm2, %v4872_v62  ;;  %4711 = vmatprep.mubr.msk.bf16.mxu1 %vm1022_vm2, %v4873_v63  ;;  %v4920_v62 = vld [vmem:[%s5035_s30 + $0x1a0] sm:$0xff]  }
  0x8b   : > { %4600 = vmatmul.mubr.msk.bf16.gmra.mxu0 %vm1022_vm2, %v4874_v0  ;;  %4712 = vmatmul.mubr.msk.bf16.gmra.mxu1 %vm1022_vm2, %v4875_v1 }
  0x8c   : > { %4603 = vmatprep.mubr.msk.bf16.mxu0 %vm1022_vm2, %v4876_v2  ;;  %4715 = vmatprep.mubr.msk.bf16.mxu1 %vm1022_vm2, %v4877_v3  ;;  %v4921_v3 = vld [vmem:[%s5035_s30 + $0x360] sm:$0xff]  }
  0x93   : > { %4604 = vmatmul.mubr.msk.bf16.gmra.mxu0 %vm1022_vm2, %v4878_v4  ;;  %4716 = vmatmul.mubr.msk.bf16.gmra.mxu1 %vm1022_vm2, %v4879_v5 }
  0x94   : > { %4607 = vmatprep.mubr.msk.bf16.mxu0 %vm1022_vm2, %v4880_v6  ;;  %4719 = vmatprep.mubr.msk.bf16.mxu1 %vm1022_vm2, %v4881_v7 }
  0x9b   : > { %4608 = vmatmul.mubr.msk.bf16.gmra.mxu0 %vm1022_vm2, %v4882_v8  ;;  %4720 = vmatmul.mubr.msk.bf16.gmra.mxu1 %vm1022_vm2, %v4883_v9 }
  0x9c   : > { %4611 = vmatprep.mubr.msk.bf16.mxu0 %vm1022_vm2, %v4884_v10  ;;  %4723 = vmatprep.mubr.msk.bf16.mxu1 %vm1022_vm2, %v4885_v11 }
  0xa3   : > { %4612 = vmatmul.mubr.msk.bf16.gmra.mxu0 %vm1022_vm2, %v4886_v12  ;;  %4724 = vmatmul.mubr.msk.bf16.gmra.mxu1 %vm1022_vm2, %v4887_v13 }
  0xa4   : > { %4615 = vmatprep.mubr.msk.bf16.mxu0 %vm1022_vm2, %v4888_v14  ;;  %4727 = vmatprep.mubr.msk.bf16.mxu1 %vm1022_vm2, %v4889_v15 }
  0xab   : > { %4616 = vmatmul.mubr.msk.bf16.gmra.mxu0 %vm1022_vm2, %v4890_v16  ;;  %4728 = vmatmul.mubr.msk.bf16.gmra.mxu1 %vm1022_vm2, %v4891_v17 }
  0xac   : > { %4619 = vmatprep.mubr.msk.bf16.mxu0 %vm1022_vm2, %v4892_v18  ;;  %4731 = vmatprep.mubr.msk.bf16.mxu1 %vm1022_vm2, %v4893_v19 }
  0xb3   : > { %4620 = vmatmul.mubr.msk.bf16.gmra.mxu0 %vm1022_vm2, %v4894_v20  ;;  %4732 = vmatmul.mubr.msk.bf16.gmra.mxu1 %vm1022_vm2, %v4895_v21 }
  0xb4   : > { %4623 = vmatprep.mubr.msk.bf16.mxu0 %vm1022_vm2, %v4896_v22  ;;  %4735 = vmatprep.mubr.msk.bf16.mxu1 %vm1022_vm2, %v4897_v23 }
  0xbb   : > { %4624 = vmatmul.mubr.msk.bf16.gmra.mxu0 %vm1022_vm2, %v4898_v24  ;;  %4736 = vmatmul.mubr.msk.bf16.gmra.mxu1 %vm1022_vm2, %v4899_v25 }
  0xbc   : > { %4627 = vmatprep.mubr.msk.bf16.mxu0 %vm1022_vm2, %v4900_v26  ;;  %4739 = vmatprep.mubr.msk.bf16.mxu1 %vm1022_vm2, %v4901_v27 }
  0xc3   : > { %4628 = vmatmul.mubr.msk.bf16.gmra.mxu0 %vm1022_vm2, %v4902_v28  ;;  %4740 = vmatmul.mubr.msk.bf16.gmra.mxu1 %vm1022_vm2, %v4903_v29  ;;  %v4922_v28 = vld [vmem:[%s5035_s30 + $0x1a8] sm:$0xff]  }
  0xc4   : > { %4631 = vmatprep.mubr.msk.bf16.mxu0 %vm1022_vm2, %v4904_v30  ;;  %4743 = vmatprep.mubr.msk.bf16.mxu1 %vm1022_vm2, %v4905_v31 }
  0xcb   : > { %4632 = vmatmul.mubr.msk.bf16.gmra.mxu0 %vm1022_vm2, %v4906_v32  ;;  %4744 = vmatmul.mubr.msk.bf16.gmra.mxu1 %vm1022_vm2, %v4907_v33  ;;  %v4923_v33 = vld [vmem:[%s5035_s30 + $0x368] sm:$0xff]  }
  0xcc   : > { %4635 = vmatprep.mubr.msk.bf16.mxu0 %vm1022_vm2, %v4908_v34  ;;  %4747 = vmatprep.mubr.msk.bf16.mxu1 %vm1022_vm2, %v4909_v35  ;;  %v4924_v34 = vld [vmem:[%s5035_s30 + $0x1b0] sm:$0xff]  }
  0xd3   : > { %4636 = vmatmul.mubr.msk.bf16.gmra.mxu0 %vm1022_vm2, %v4910_v36  ;;  %4748 = vmatmul.mubr.msk.bf16.gmra.mxu1 %vm1022_vm2, %v4911_v37 }
  0xd4   : > { %4639 = vmatprep.mubr.msk.bf16.mxu0 %vm1022_vm2, %v4912_v38  ;;  %4751 = vmatprep.mubr.msk.bf16.mxu1 %vm1022_vm2, %v4913_v39  ;;  %v4925_v39 = vld [vmem:[%s5035_s30 + $0x370] sm:$0xff]  }
  0xdb   : > { %v4545_v45 = vpop.f32.mrf.mxu0  ;;  %4640 = vmatmul.mubr.msk.bf16.gmra.mxu0 %vm1022_vm2, %v4914_v40  ;;  %v4657_v47 = vpop.f32.mrf.mxu1  ;;  %4752 = vmatmul.mubr.msk.bf16.gmra.mxu1 %vm1022_vm2, %v4915_v41 }
  0xdc   : > { %v1409_v46 = vadd.f32 %v4545_v45, %v5239_v43  ;;  %4643 = vmatprep.mubr.msk.bf16.mxu0 %vm1022_vm2, %v4916_v42  ;;  %v1857_v48 = vadd.f32 %v4657_v47, %v5239_v43  ;;  %4755 = vmatprep.mubr.msk.bf16.mxu1 %vm1022_vm2, %v4917_v44 }
  0xdd   : > { %v1400_v49 = vpop.f32.mrf.mxu0  ;;  %v1848_v52 = vpop.f32.mrf.mxu1 }
  0xde   : > { %v2297_v50 = vmax.f32 %v1409_v46, 0.0  ;;  %v1401_v51 = vadd.f32 %v5239_v43, %v1400_v49  ;;  %v2409_v53 = vmax.f32 %v1857_v48, 0.0  ;;  %v1849_v54 = vadd.f32 %v5239_v43, %v1848_v52 }
  0xdf   : > { %v4546_v55 = vpop.f32.mrf.mxu0  ;;  %v4658_v60 = vpop.f32.mrf.mxu1 }
  0xe0   : > { %v4203_v57 = vpack.c.bf16 %v2297_v50, %v2297_v50  ;;  %v2295_v58 = vmax.f32 %v1401_v51, 0.0  ;;  %v1412_v59 = vadd.f32 %v4546_v55, %v5239_v43  ;;  %v4315_v63 = vpack.c.bf16 %v2409_v53, %v2409_v53 }
  0xe1   : > { %v2407_v0 = vmax.f32 %v1849_v54, 0.0  ;;  %v1860_v1 = vadd.f32 %v4658_v60, %v5239_v43  ;;  %v1403_v2 = vpop.f32.mrf.mxu0  ;;  %v1851_v7 = vpop.f32.mrf.mxu1 }
  0xe2   : > { %3418 = vst.msk [vmem:[%s5254_s8 + $0x8] sm:$0xf] %vm3415_vm3, %v4203_v57  ;;  %v4201_v4 = vpack.c.bf16 %v2295_v58, %v2295_v58  ;;  %v2298_v5 = vmax.f32 %v1412_v59, 0.0  ;;  %v1404_v6 = vadd.f32 %v5239_v43, %v1403_v2  ;;  %3530 = vst.msk [vmem:[%s5254_s8 + $0x1c8] sm:$0xf] %vm3415_vm3, %v4315_v63  ;;  %v1852_v10 = vadd.f32 %v5239_v43, %v1851_v7 }
  0xe3   : > { %v4313_v8 = vpack.c.bf16 %v2407_v0, %v2407_v0  ;;  %v2410_v9 = vmax.f32 %v1860_v1, 0.0  ;;  %v4549_v11 = vpop.f32.mrf.mxu0  ;;  %4644 = vmatmul.mubr.msk.bf16.gmra.mxu0 %vm1022_vm2, %v4918_v56  ;;  %v4661_v15 = vpop.f32.mrf.mxu1  ;;  %4756 = vmatmul.mubr.msk.bf16.gmra.mxu1 %vm1022_vm2, %v4919_v61  ;;  %v4926_v1 = vld [vmem:[%s5035_s30 + $0x1b8] sm:$0xff]  }
  0xe4   : > { %3416 = vst.msk [vmem:[%s5254_s8] sm:$0xf] %vm3415_vm3, %v4201_v4  ;;  %v4204_v12 = vpack.c.bf16 %v2298_v5, %v2298_v5  ;;  %v2296_v13 = vmax.f32 %v1404_v6, 0.0  ;;  %v1425_v14 = vadd.f32 %v4549_v11, %v5239_v43  ;;  %4647 = vmatprep.mubr.msk.bf16.mxu0 %vm1022_vm2, %v4920_v62  ;;  %v2408_v17 = vmax.f32 %v1852_v10, 0.0  ;;  %4759 = vmatprep.mubr.msk.bf16.mxu1 %vm1022_vm2, %v4921_v3  ;;  %v4927_v6 = vld [vmem:[%s5035_s30 + $0x378] sm:$0xff]  }
  0xe5   : > { %3528 = vst.msk [vmem:[%s5254_s8 + $0x1c0] sm:$0xf] %vm3415_vm3, %v4313_v8  ;;  %v4316_v16 = vpack.c.bf16 %v2410_v9, %v2410_v9  ;;  %v1873_v18 = vadd.f32 %v4661_v15, %v5239_v43  ;;  %v1416_v19 = vpop.f32.mrf.mxu0  ;;  %v1864_v23 = vpop.f32.mrf.mxu1 }
  0xe6   : > { %3419 = vst.msk [vmem:[%s5254_s8 + $0xc] sm:$0xf] %vm3415_vm3, %v4204_v12  ;;  %v4202_v20 = vpack.c.bf16 %v2296_v13, %v2296_v13  ;;  %v2301_v21 = vmax.f32 %v1425_v14, 0.0  ;;  %v1417_v22 = vadd.f32 %v5239_v43, %v1416_v19  ;;  %v4314_v24 = vpack.c.bf16 %v2408_v17, %v2408_v17 }
  0xe7   : > { %3531 = vst.msk [vmem:[%s5254_s8 + $0x1cc] sm:$0xf] %vm3415_vm3, %v4316_v16  ;;  %v2413_v25 = vmax.f32 %v1873_v18, 0.0  ;;  %v1865_v26 = vadd.f32 %v5239_v43, %v1864_v23  ;;  %v4550_v27 = vpop.f32.mrf.mxu0  ;;  %v4662_v32 = vpop.f32.mrf.mxu1 }
  0xe8   : > { %3417 = vst.msk [vmem:[%s5254_s8 + $0x4] sm:$0xf] %vm3415_vm3, %v4202_v20  ;;  %v4207_v29 = vpack.c.bf16 %v2301_v21, %v2301_v21  ;;  %v2299_v30 = vmax.f32 %v1417_v22, 0.0  ;;  %v1428_v31 = vadd.f32 %v4550_v27, %v5239_v43  ;;  %3529 = vst.msk [vmem:[%s5254_s8 + $0x1c4] sm:$0xf] %vm3415_vm3, %v4314_v24  ;;  %v1876_v37 = vadd.f32 %v4662_v32, %v5239_v43 }
  0xe9   : > { %v4319_v35 = vpack.c.bf16 %v2413_v25, %v2413_v25  ;;  %v2411_v36 = vmax.f32 %v1865_v26, 0.0  ;;  %v1419_v38 = vpop.f32.mrf.mxu0  ;;  %v1867_v44 = vpop.f32.mrf.mxu1 }
  0xea   : > { %3422 = vst.msk [vmem:[%s5254_s8 + $0x18] sm:$0xf] %vm3415_vm3, %v4207_v29  ;;  %v4205_v40 = vpack.c.bf16 %v2299_v30, %v2299_v30  ;;  %v2302_v41 = vmax.f32 %v1428_v31, 0.0  ;;  %v1420_v42 = vadd.f32 %v5239_v43, %v1419_v38  ;;  %v2414_v46 = vmax.f32 %v1876_v37, 0.0 }
  0xeb   : > { %3534 = vst.msk [vmem:[%s5254_s8 + $0x1d8] sm:$0xf] %vm3415_vm3, %v4319_v35  ;;  %v4317_v45 = vpack.c.bf16 %v2411_v36, %v2411_v36  ;;  %v1868_v47 = vadd.f32 %v5239_v43, %v1867_v44  ;;  %v4553_v48 = vpop.f32.mrf.mxu0  ;;  %4648 = vmatmul.mubr.msk.bf16.gmra.mxu0 %vm1022_vm2, %v4922_v28  ;;  %v4665_v52 = vpop.f32.mrf.mxu1  ;;  %4760 = vmatmul.mubr.msk.bf16.gmra.mxu1 %vm1022_vm2, %v4923_v33 }
  0xec   : > { %3420 = vst.msk [vmem:[%s5254_s8 + $0x10] sm:$0xf] %vm3415_vm3, %v4205_v40  ;;  %v4208_v49 = vpack.c.bf16 %v2302_v41, %v2302_v41  ;;  %v2300_v50 = vmax.f32 %v1420_v42, 0.0  ;;  %v1441_v51 = vadd.f32 %v4553_v48, %v5239_v43  ;;  %4651 = vmatprep.mubr.msk.bf16.mxu0 %vm1022_vm2, %v4924_v34  ;;  %v4320_v53 = vpack.c.bf16 %v2414_v46, %v2414_v46 }
  0xed   : > { %3532 = vst.msk [vmem:[%s5254_s8 + $0x1d0] sm:$0xf] %vm3415_vm3, %v4317_v45  ;;  %v2412_v54 = vmax.f32 %v1868_v47, 0.0  ;;  %v1889_v55 = vadd.f32 %v4665_v52, %v5239_v43  ;;  %v1432_v56 = vpop.f32.mrf.mxu0  ;;  %4763 = vmatprep.mubr.msk.bf16.mxu1 %vm1022_vm2, %v4925_v39  ;;  %v1880_v60 = vpop.f32.mrf.mxu1 }
  0xee   : > { %3423 = vst.msk [vmem:[%s5254_s8 + $0x1c] sm:$0xf] %vm3415_vm3, %v4208_v49  ;;  %v4206_v57 = vpack.c.bf16 %v2300_v50, %v2300_v50  ;;  %v2305_v58 = vmax.f32 %v1441_v51, 0.0  ;;  %v1433_v59 = vadd.f32 %v5239_v43, %v1432_v56  ;;  %3535 = vst.msk [vmem:[%s5254_s8 + $0x1dc] sm:$0xf] %vm3415_vm3, %v4320_v53  ;;  %v1881_v63 = vadd.f32 %v5239_v43, %v1880_v60 }
  0xef   : > { %v4318_v61 = vpack.c.bf16 %v2412_v54, %v2412_v54  ;;  %v2417_v62 = vmax.f32 %v1889_v55, 0.0  ;;  %v4554_v0 = vpop.f32.mrf.mxu0  ;;  %v4666_v5 = vpop.f32.mrf.mxu1 }
  0xf0   : > { %3421 = vst.msk [vmem:[%s5254_s8 + $0x14] sm:$0xf] %vm3415_vm3, %v4206_v57  ;;  %v4211_v2 = vpack.c.bf16 %v2305_v58, %v2305_v58  ;;  %v2303_v3 = vmax.f32 %v1433_v59, 0.0  ;;  %v1444_v4 = vadd.f32 %v4554_v0, %v5239_v43  ;;  %v2415_v8 = vmax.f32 %v1881_v63, 0.0 }
  0xf1   : > { %3533 = vst.msk [vmem:[%s5254_s8 + $0x1d4] sm:$0xf] %vm3415_vm3, %v4318_v61  ;;  %v4323_v7 = vpack.c.bf16 %v2417_v62, %v2417_v62  ;;  %v1892_v9 = vadd.f32 %v4666_v5, %v5239_v43  ;;  %v1435_v10 = vpop.f32.mrf.mxu0  ;;  %v1883_v14 = vpop.f32.mrf.mxu1 }
  0xf2   : > { %3426 = vst.msk [vmem:[%s5254_s8 + $0x28] sm:$0xf] %vm3415_vm3, %v4211_v2  ;;  %v4209_v11 = vpack.c.bf16 %v2303_v3, %v2303_v3  ;;  %v2306_v12 = vmax.f32 %v1444_v4, 0.0  ;;  %v1436_v13 = vadd.f32 %v5239_v43, %v1435_v10  ;;  %v4321_v15 = vpack.c.bf16 %v2415_v8, %v2415_v8 }
  0xf3   : > { %3538 = vst.msk [vmem:[%s5254_s8 + $0x1e8] sm:$0xf] %vm3415_vm3, %v4323_v7  ;;  %v2418_v16 = vmax.f32 %v1892_v9, 0.0  ;;  %v1884_v17 = vadd.f32 %v5239_v43, %v1883_v14  ;;  %v4557_v18 = vpop.f32.mrf.mxu0  ;;  %4652 = vmatmul.mubr.msk.bf16.gmra.mxu0 %vm1022_vm2, %v4926_v1  ;;  %v4669_v22 = vpop.f32.mrf.mxu1  ;;  %4764 = vmatmul.mubr.msk.bf16.gmra.mxu1 %vm1022_vm2, %v4927_v6 }
  0xf4   : > { %3424 = vst.msk [vmem:[%s5254_s8 + $0x20] sm:$0xf] %vm3415_vm3, %v4209_v11  ;;  %v4212_v19 = vpack.c.bf16 %v2306_v12, %v2306_v12  ;;  %v2304_v20 = vmax.f32 %v1436_v13, 0.0  ;;  %v1457_v21 = vadd.f32 %v4557_v18, %v5239_v43  ;;  %3536 = vst.msk [vmem:[%s5254_s8 + $0x1e0] sm:$0xf] %vm3415_vm3, %v4321_v15  ;;  %v1905_v25 = vadd.f32 %v4669_v22, %v5239_v43 }
  0xf5   : > { %v4324_v23 = vpack.c.bf16 %v2418_v16, %v2418_v16  ;;  %v2416_v24 = vmax.f32 %v1884_v17, 0.0  ;;  %v1448_v26 = vpop.f32.mrf.mxu0  ;;  %v1896_v30 = vpop.f32.mrf.mxu1 }
  0xf6   : > { %3427 = vst.msk [vmem:[%s5254_s8 + $0x2c] sm:$0xf] %vm3415_vm3, %v4212_v19  ;;  %v4210_v27 = vpack.c.bf16 %v2304_v20, %v2304_v20  ;;  %v2309_v28 = vmax.f32 %v1457_v21, 0.0  ;;  %v1449_v29 = vadd.f32 %v5239_v43, %v1448_v26  ;;  %v2421_v32 = vmax.f32 %v1905_v25, 0.0 }
  0xf7   : > { %3539 = vst.msk [vmem:[%s5254_s8 + $0x1ec] sm:$0xf] %vm3415_vm3, %v4324_v23  ;;  %v4322_v31 = vpack.c.bf16 %v2416_v24, %v2416_v24  ;;  %v1897_v33 = vadd.f32 %v5239_v43, %v1896_v30  ;;  %v4558_v34 = vpop.f32.mrf.mxu0  ;;  %v4670_v38 = vpop.f32.mrf.mxu1 }
  0xf8   : > { %3425 = vst.msk [vmem:[%s5254_s8 + $0x24] sm:$0xf] %vm3415_vm3, %v4210_v27  ;;  %v4215_v35 = vpack.c.bf16 %v2309_v28, %v2309_v28  ;;  %v2307_v36 = vmax.f32 %v1449_v29, 0.0  ;;  %v1460_v37 = vadd.f32 %v4558_v34, %v5239_v43  ;;  %v4327_v39 = vpack.c.bf16 %v2421_v32, %v2421_v32 }
  0xf9   : > { %3537 = vst.msk [vmem:[%s5254_s8 + $0x1e4] sm:$0xf] %vm3415_vm3, %v4322_v31  ;;  %v2419_v40 = vmax.f32 %v1897_v33, 0.0  ;;  %v1908_v41 = vadd.f32 %v4670_v38, %v5239_v43  ;;  %v1451_v42 = vpop.f32.mrf.mxu0  ;;  %v1899_v47 = vpop.f32.mrf.mxu1 }
  0xfa   : > { %3430 = vst.msk [vmem:[%s5254_s8 + $0x38] sm:$0xf] %vm3415_vm3, %v4215_v35  ;;  %v4213_v44 = vpack.c.bf16 %v2307_v36, %v2307_v36  ;;  %v2310_v45 = vmax.f32 %v1460_v37, 0.0  ;;  %v1452_v46 = vadd.f32 %v5239_v43, %v1451_v42  ;;  %3542 = vst.msk [vmem:[%s5254_s8 + $0x1f8] sm:$0xf] %vm3415_vm3, %v4327_v39  ;;  %v1900_v50 = vadd.f32 %v5239_v43, %v1899_v47 }
  0xfb   : > { %v4325_v48 = vpack.c.bf16 %v2419_v40, %v2419_v40  ;;  %v2422_v49 = vmax.f32 %v1908_v41, 0.0  ;;  %v4561_v51 = vpop.f32.mrf.mxu0  ;;  %v4673_v55 = vpop.f32.mrf.mxu1 }
  0xfc   : > { %3428 = vst.msk [vmem:[%s5254_s8 + $0x30] sm:$0xf] %vm3415_vm3, %v4213_v44  ;;  %v4216_v52 = vpack.c.bf16 %v2310_v45, %v2310_v45  ;;  %v2308_v53 = vmax.f32 %v1452_v46, 0.0  ;;  %v1473_v54 = vadd.f32 %v4561_v51, %v5239_v43  ;;  %v2420_v57 = vmax.f32 %v1900_v50, 0.0 }
  0xfd   : > { %3540 = vst.msk [vmem:[%s5254_s8 + $0x1f0] sm:$0xf] %vm3415_vm3, %v4325_v48  ;;  %v4328_v56 = vpack.c.bf16 %v2422_v49, %v2422_v49  ;;  %v1921_v58 = vadd.f32 %v4673_v55, %v5239_v43  ;;  %v1464_v59 = vpop.f32.mrf.mxu0  ;;  %v1912_v63 = vpop.f32.mrf.mxu1 }
  0xfe   : > { %3431 = vst.msk [vmem:[%s5254_s8 + $0x3c] sm:$0xf] %vm3415_vm3, %v4216_v52  ;;  %v4214_v60 = vpack.c.bf16 %v2308_v53, %v2308_v53  ;;  %v2313_v61 = vmax.f32 %v1473_v54, 0.0  ;;  %v1465_v62 = vadd.f32 %v5239_v43, %v1464_v59  ;;  %v4326_v0 = vpack.c.bf16 %v2420_v57, %v2420_v57 }
  0xff   : > { %3543 = vst.msk [vmem:[%s5254_s8 + $0x1fc] sm:$0xf] %vm3415_vm3, %v4328_v56  ;;  %v2425_v1 = vmax.f32 %v1921_v58, 0.0  ;;  %v1913_v2 = vadd.f32 %v5239_v43, %v1912_v63  ;;  %v4562_v3 = vpop.f32.mrf.mxu0  ;;  %v4674_v7 = vpop.f32.mrf.mxu1 }
 0x100   : > { %3429 = vst.msk [vmem:[%s5254_s8 + $0x34] sm:$0xf] %vm3415_vm3, %v4214_v60  ;;  %v4219_v4 = vpack.c.bf16 %v2313_v61, %v2313_v61  ;;  %v2311_v5 = vmax.f32 %v1465_v62, 0.0  ;;  %v1476_v6 = vadd.f32 %v4562_v3, %v5239_v43  ;;  %3541 = vst.msk [vmem:[%s5254_s8 + $0x1f4] sm:$0xf] %vm3415_vm3, %v4326_v0  ;;  %v1924_v10 = vadd.f32 %v4674_v7, %v5239_v43 }
 0x101   : > { %v4331_v8 = vpack.c.bf16 %v2425_v1, %v2425_v1  ;;  %v2423_v9 = vmax.f32 %v1913_v2, 0.0  ;;  %v1467_v11 = vpop.f32.mrf.mxu0  ;;  %v1915_v15 = vpop.f32.mrf.mxu1 }
 0x102   : > { %3434 = vst.msk [vmem:[%s5254_s8 + $0x48] sm:$0xf] %vm3415_vm3, %v4219_v4  ;;  %v4217_v12 = vpack.c.bf16 %v2311_v5, %v2311_v5  ;;  %v2314_v13 = vmax.f32 %v1476_v6, 0.0  ;;  %v1468_v14 = vadd.f32 %v5239_v43, %v1467_v11  ;;  %v2426_v17 = vmax.f32 %v1924_v10, 0.0 }
 0x103   : > { %3546 = vst.msk [vmem:[%s5254_s8 + $0x208] sm:$0xf] %vm3415_vm3, %v4331_v8  ;;  %v4329_v16 = vpack.c.bf16 %v2423_v9, %v2423_v9  ;;  %v1916_v18 = vadd.f32 %v5239_v43, %v1915_v15  ;;  %v4565_v19 = vpop.f32.mrf.mxu0  ;;  %v4677_v23 = vpop.f32.mrf.mxu1 }
 0x104   : > { %3432 = vst.msk [vmem:[%s5254_s8 + $0x40] sm:$0xf] %vm3415_vm3, %v4217_v12  ;;  %v4220_v20 = vpack.c.bf16 %v2314_v13, %v2314_v13  ;;  %v2312_v21 = vmax.f32 %v1468_v14, 0.0  ;;  %v1489_v22 = vadd.f32 %v4565_v19, %v5239_v43  ;;  %v4332_v24 = vpack.c.bf16 %v2426_v17, %v2426_v17 }
 0x105   : > { %3544 = vst.msk [vmem:[%s5254_s8 + $0x200] sm:$0xf] %vm3415_vm3, %v4329_v16  ;;  %v2424_v25 = vmax.f32 %v1916_v18, 0.0  ;;  %v1937_v26 = vadd.f32 %v4677_v23, %v5239_v43  ;;  %v1480_v27 = vpop.f32.mrf.mxu0  ;;  %v1928_v31 = vpop.f32.mrf.mxu1 }
 0x106   : > { %3435 = vst.msk [vmem:[%s5254_s8 + $0x4c] sm:$0xf] %vm3415_vm3, %v4220_v20  ;;  %v4218_v28 = vpack.c.bf16 %v2312_v21, %v2312_v21  ;;  %v2317_v29 = vmax.f32 %v1489_v22, 0.0  ;;  %v1481_v30 = vadd.f32 %v5239_v43, %v1480_v27  ;;  %3547 = vst.msk [vmem:[%s5254_s8 + $0x20c] sm:$0xf] %vm3415_vm3, %v4332_v24  ;;  %v1929_v34 = vadd.f32 %v5239_v43, %v1928_v31 }
 0x107   : > { %v4330_v32 = vpack.c.bf16 %v2424_v25, %v2424_v25  ;;  %v2429_v33 = vmax.f32 %v1937_v26, 0.0  ;;  %v4566_v35 = vpop.f32.mrf.mxu0  ;;  %v4678_v39 = vpop.f32.mrf.mxu1 }
 0x108   : > { %3433 = vst.msk [vmem:[%s5254_s8 + $0x44] sm:$0xf] %vm3415_vm3, %v4218_v28  ;;  %v4223_v36 = vpack.c.bf16 %v2317_v29, %v2317_v29  ;;  %v2315_v37 = vmax.f32 %v1481_v30, 0.0  ;;  %v1492_v38 = vadd.f32 %v4566_v35, %v5239_v43  ;;  %v2427_v41 = vmax.f32 %v1929_v34, 0.0 }
 0x109   : > { %3545 = vst.msk [vmem:[%s5254_s8 + $0x204] sm:$0xf] %vm3415_vm3, %v4330_v32  ;;  %v4335_v40 = vpack.c.bf16 %v2429_v33, %v2429_v33  ;;  %v1940_v42 = vadd.f32 %v4678_v39, %v5239_v43  ;;  %v1483_v44 = vpop.f32.mrf.mxu0  ;;  %v1931_v48 = vpop.f32.mrf.mxu1 }
 0x10a   : > { %3438 = vst.msk [vmem:[%s5254_s8 + $0x58] sm:$0xf] %vm3415_vm3, %v4223_v36  ;;  %v4221_v45 = vpack.c.bf16 %v2315_v37, %v2315_v37  ;;  %v2318_v46 = vmax.f32 %v1492_v38, 0.0  ;;  %v1484_v47 = vadd.f32 %v5239_v43, %v1483_v44  ;;  %v4333_v49 = vpack.c.bf16 %v2427_v41, %v2427_v41 }
 0x10b   : > { %3550 = vst.msk [vmem:[%s5254_s8 + $0x218] sm:$0xf] %vm3415_vm3, %v4335_v40  ;;  %v2430_v50 = vmax.f32 %v1940_v42, 0.0  ;;  %v1932_v51 = vadd.f32 %v5239_v43, %v1931_v48  ;;  %v4569_v52 = vpop.f32.mrf.mxu0  ;;  %v4681_v56 = vpop.f32.mrf.mxu1 }
 0x10c   : > { %3436 = vst.msk [vmem:[%s5254_s8 + $0x50] sm:$0xf] %vm3415_vm3, %v4221_v45  ;;  %v4224_v53 = vpack.c.bf16 %v2318_v46, %v2318_v46  ;;  %v2316_v54 = vmax.f32 %v1484_v47, 0.0  ;;  %v1505_v55 = vadd.f32 %v4569_v52, %v5239_v43  ;;  %3548 = vst.msk [vmem:[%s5254_s8 + $0x210] sm:$0xf] %vm3415_vm3, %v4333_v49  ;;  %v1953_v59 = vadd.f32 %v4681_v56, %v5239_v43 }
 0x10d   : > { %v4336_v57 = vpack.c.bf16 %v2430_v50, %v2430_v50  ;;  %v2428_v58 = vmax.f32 %v1932_v51, 0.0  ;;  %v1496_v60 = vpop.f32.mrf.mxu0  ;;  %v1944_v0 = vpop.f32.mrf.mxu1 }
 0x10e   : > { %3439 = vst.msk [vmem:[%s5254_s8 + $0x5c] sm:$0xf] %vm3415_vm3, %v4224_v53  ;;  %v4222_v61 = vpack.c.bf16 %v2316_v54, %v2316_v54  ;;  %v2321_v62 = vmax.f32 %v1505_v55, 0.0  ;;  %v1497_v63 = vadd.f32 %v5239_v43, %v1496_v60  ;;  %v2433_v2 = vmax.f32 %v1953_v59, 0.0 }
 0x10f   : > { %3551 = vst.msk [vmem:[%s5254_s8 + $0x21c] sm:$0xf] %vm3415_vm3, %v4336_v57  ;;  %v4334_v1 = vpack.c.bf16 %v2428_v58, %v2428_v58  ;;  %v1945_v3 = vadd.f32 %v5239_v43, %v1944_v0  ;;  %v4570_v4 = vpop.f32.mrf.mxu0  ;;  %v4682_v8 = vpop.f32.mrf.mxu1 }
 0x110   : > { %3437 = vst.msk [vmem:[%s5254_s8 + $0x54] sm:$0xf] %vm3415_vm3, %v4222_v61  ;;  %v4227_v5 = vpack.c.bf16 %v2321_v62, %v2321_v62  ;;  %v2319_v6 = vmax.f32 %v1497_v63, 0.0  ;;  %v1508_v7 = vadd.f32 %v4570_v4, %v5239_v43  ;;  %v4339_v9 = vpack.c.bf16 %v2433_v2, %v2433_v2 }
 0x111   : > { %3549 = vst.msk [vmem:[%s5254_s8 + $0x214] sm:$0xf] %vm3415_vm3, %v4334_v1  ;;  %v2431_v10 = vmax.f32 %v1945_v3, 0.0  ;;  %v1956_v11 = vadd.f32 %v4682_v8, %v5239_v43  ;;  %v1499_v12 = vpop.f32.mrf.mxu0  ;;  %v1947_v16 = vpop.f32.mrf.mxu1 }
 0x112   : > { %3442 = vst.msk [vmem:[%s5254_s8 + $0x68] sm:$0xf] %vm3415_vm3, %v4227_v5  ;;  %v4225_v13 = vpack.c.bf16 %v2319_v6, %v2319_v6  ;;  %v2322_v14 = vmax.f32 %v1508_v7, 0.0  ;;  %v1500_v15 = vadd.f32 %v5239_v43, %v1499_v12  ;;  %3554 = vst.msk [vmem:[%s5254_s8 + $0x228] sm:$0xf] %vm3415_vm3, %v4339_v9  ;;  %v1948_v19 = vadd.f32 %v5239_v43, %v1947_v16 }
 0x113   : > { %v4337_v17 = vpack.c.bf16 %v2431_v10, %v2431_v10  ;;  %v2434_v18 = vmax.f32 %v1956_v11, 0.0  ;;  %v4573_v20 = vpop.f32.mrf.mxu0  ;;  %v4685_v24 = vpop.f32.mrf.mxu1 }
 0x114   : > { %3440 = vst.msk [vmem:[%s5254_s8 + $0x60] sm:$0xf] %vm3415_vm3, %v4225_v13  ;;  %v4228_v21 = vpack.c.bf16 %v2322_v14, %v2322_v14  ;;  %v2320_v22 = vmax.f32 %v1500_v15, 0.0  ;;  %v1521_v23 = vadd.f32 %v4573_v20, %v5239_v43  ;;  %v2432_v26 = vmax.f32 %v1948_v19, 0.0 }
 0x115   : > { %3552 = vst.msk [vmem:[%s5254_s8 + $0x220] sm:$0xf] %vm3415_vm3, %v4337_v17  ;;  %v4340_v25 = vpack.c.bf16 %v2434_v18, %v2434_v18  ;;  %v1969_v27 = vadd.f32 %v4685_v24, %v5239_v43  ;;  %v1512_v28 = vpop.f32.mrf.mxu0  ;;  %v1960_v32 = vpop.f32.mrf.mxu1 }
 0x116   : > { %3443 = vst.msk [vmem:[%s5254_s8 + $0x6c] sm:$0xf] %vm3415_vm3, %v4228_v21  ;;  %v4226_v29 = vpack.c.bf16 %v2320_v22, %v2320_v22  ;;  %v2325_v30 = vmax.f32 %v1521_v23, 0.0  ;;  %v1513_v31 = vadd.f32 %v5239_v43, %v1512_v28  ;;  %v4338_v33 = vpack.c.bf16 %v2432_v26, %v2432_v26 }
 0x117   : > { %3555 = vst.msk [vmem:[%s5254_s8 + $0x22c] sm:$0xf] %vm3415_vm3, %v4340_v25  ;;  %v2437_v34 = vmax.f32 %v1969_v27, 0.0  ;;  %v1961_v35 = vadd.f32 %v5239_v43, %v1960_v32  ;;  %v4574_v36 = vpop.f32.mrf.mxu0  ;;  %v4686_v40 = vpop.f32.mrf.mxu1 }
 0x118   : > { %3441 = vst.msk [vmem:[%s5254_s8 + $0x64] sm:$0xf] %vm3415_vm3, %v4226_v29  ;;  %v4231_v37 = vpack.c.bf16 %v2325_v30, %v2325_v30  ;;  %v2323_v38 = vmax.f32 %v1513_v31, 0.0  ;;  %v1524_v39 = vadd.f32 %v4574_v36, %v5239_v43  ;;  %3553 = vst.msk [vmem:[%s5254_s8 + $0x224] sm:$0xf] %vm3415_vm3, %v4338_v33  ;;  %v1972_v44 = vadd.f32 %v4686_v40, %v5239_v43 }
 0x119   : > { %v4343_v41 = vpack.c.bf16 %v2437_v34, %v2437_v34  ;;  %v2435_v42 = vmax.f32 %v1961_v35, 0.0  ;;  %v1515_v45 = vpop.f32.mrf.mxu0  ;;  %v1963_v49 = vpop.f32.mrf.mxu1 }
 0x11a   : > { %3446 = vst.msk [vmem:[%s5254_s8 + $0x78] sm:$0xf] %vm3415_vm3, %v4231_v37  ;;  %v4229_v46 = vpack.c.bf16 %v2323_v38, %v2323_v38  ;;  %v2326_v47 = vmax.f32 %v1524_v39, 0.0  ;;  %v1516_v48 = vadd.f32 %v5239_v43, %v1515_v45  ;;  %v2438_v51 = vmax.f32 %v1972_v44, 0.0 }
 0x11b   : > { %3558 = vst.msk [vmem:[%s5254_s8 + $0x238] sm:$0xf] %vm3415_vm3, %v4343_v41  ;;  %v4341_v50 = vpack.c.bf16 %v2435_v42, %v2435_v42  ;;  %v1964_v52 = vadd.f32 %v5239_v43, %v1963_v49  ;;  %v4577_v53 = vpop.f32.mrf.mxu0  ;;  %v4689_v57 = vpop.f32.mrf.mxu1 }
 0x11c   : > { %3444 = vst.msk [vmem:[%s5254_s8 + $0x70] sm:$0xf] %vm3415_vm3, %v4229_v46  ;;  %v4232_v54 = vpack.c.bf16 %v2326_v47, %v2326_v47  ;;  %v2324_v55 = vmax.f32 %v1516_v48, 0.0  ;;  %v1537_v56 = vadd.f32 %v4577_v53, %v5239_v43  ;;  %v4344_v58 = vpack.c.bf16 %v2438_v51, %v2438_v51 }
 0x11d   : > { %3556 = vst.msk [vmem:[%s5254_s8 + $0x230] sm:$0xf] %vm3415_vm3, %v4341_v50  ;;  %v2436_v59 = vmax.f32 %v1964_v52, 0.0  ;;  %v1985_v60 = vadd.f32 %v4689_v57, %v5239_v43  ;;  %v1528_v61 = vpop.f32.mrf.mxu0  ;;  %v1976_v1 = vpop.f32.mrf.mxu1 }
 0x11e   : > { %3447 = vst.msk [vmem:[%s5254_s8 + $0x7c] sm:$0xf] %vm3415_vm3, %v4232_v54  ;;  %v4230_v62 = vpack.c.bf16 %v2324_v55, %v2324_v55  ;;  %v2329_v63 = vmax.f32 %v1537_v56, 0.0  ;;  %v1529_v0 = vadd.f32 %v5239_v43, %v1528_v61  ;;  %3559 = vst.msk [vmem:[%s5254_s8 + $0x23c] sm:$0xf] %vm3415_vm3, %v4344_v58  ;;  %v1977_v4 = vadd.f32 %v5239_v43, %v1976_v1 }
 0x11f   : > { %v4342_v2 = vpack.c.bf16 %v2436_v59, %v2436_v59  ;;  %v2441_v3 = vmax.f32 %v1985_v60, 0.0  ;;  %v4578_v5 = vpop.f32.mrf.mxu0  ;;  %v4690_v9 = vpop.f32.mrf.mxu1 }
 0x120   : > { %3445 = vst.msk [vmem:[%s5254_s8 + $0x74] sm:$0xf] %vm3415_vm3, %v4230_v62  ;;  %v4235_v6 = vpack.c.bf16 %v2329_v63, %v2329_v63  ;;  %v2327_v7 = vmax.f32 %v1529_v0, 0.0  ;;  %v1540_v8 = vadd.f32 %v4578_v5, %v5239_v43  ;;  %v2439_v11 = vmax.f32 %v1977_v4, 0.0 }
 0x121   : > { %3557 = vst.msk [vmem:[%s5254_s8 + $0x234] sm:$0xf] %vm3415_vm3, %v4342_v2  ;;  %v4347_v10 = vpack.c.bf16 %v2441_v3, %v2441_v3  ;;  %v1988_v12 = vadd.f32 %v4690_v9, %v5239_v43  ;;  %v1531_v13 = vpop.f32.mrf.mxu0  ;;  %v1979_v17 = vpop.f32.mrf.mxu1 }
 0x122   : > { %3450 = vst.msk [vmem:[%s5254_s8 + $0x88] sm:$0xf] %vm3415_vm3, %v4235_v6  ;;  %v4233_v14 = vpack.c.bf16 %v2327_v7, %v2327_v7  ;;  %v2330_v15 = vmax.f32 %v1540_v8, 0.0  ;;  %v1532_v16 = vadd.f32 %v5239_v43, %v1531_v13  ;;  %v4345_v18 = vpack.c.bf16 %v2439_v11, %v2439_v11 }
 0x123   : > { %3562 = vst.msk [vmem:[%s5254_s8 + $0x248] sm:$0xf] %vm3415_vm3, %v4347_v10  ;;  %v2442_v19 = vmax.f32 %v1988_v12, 0.0  ;;  %v1980_v20 = vadd.f32 %v5239_v43, %v1979_v17  ;;  %v4581_v21 = vpop.f32.mrf.mxu0  ;;  %v4693_v25 = vpop.f32.mrf.mxu1 }
 0x124   : > { %3448 = vst.msk [vmem:[%s5254_s8 + $0x80] sm:$0xf] %vm3415_vm3, %v4233_v14  ;;  %v4236_v22 = vpack.c.bf16 %v2330_v15, %v2330_v15  ;;  %v2328_v23 = vmax.f32 %v1532_v16, 0.0  ;;  %v1553_v24 = vadd.f32 %v4581_v21, %v5239_v43  ;;  %3560 = vst.msk [vmem:[%s5254_s8 + $0x240] sm:$0xf] %vm3415_vm3, %v4345_v18  ;;  %v2001_v28 = vadd.f32 %v4693_v25, %v5239_v43 }
 0x125   : > { %v4348_v26 = vpack.c.bf16 %v2442_v19, %v2442_v19  ;;  %v2440_v27 = vmax.f32 %v1980_v20, 0.0  ;;  %v1544_v29 = vpop.f32.mrf.mxu0  ;;  %v1992_v33 = vpop.f32.mrf.mxu1 }
 0x126   : > { %3451 = vst.msk [vmem:[%s5254_s8 + $0x8c] sm:$0xf] %vm3415_vm3, %v4236_v22  ;;  %v4234_v30 = vpack.c.bf16 %v2328_v23, %v2328_v23  ;;  %v2333_v31 = vmax.f32 %v1553_v24, 0.0  ;;  %v1545_v32 = vadd.f32 %v5239_v43, %v1544_v29  ;;  %v2445_v35 = vmax.f32 %v2001_v28, 0.0 }
 0x127   : > { %3563 = vst.msk [vmem:[%s5254_s8 + $0x24c] sm:$0xf] %vm3415_vm3, %v4348_v26  ;;  %v4346_v34 = vpack.c.bf16 %v2440_v27, %v2440_v27  ;;  %v1993_v36 = vadd.f32 %v5239_v43, %v1992_v33  ;;  %v4582_v37 = vpop.f32.mrf.mxu0  ;;  %v4694_v41 = vpop.f32.mrf.mxu1 }
 0x128   : > { %3449 = vst.msk [vmem:[%s5254_s8 + $0x84] sm:$0xf] %vm3415_vm3, %v4234_v30  ;;  %v4239_v38 = vpack.c.bf16 %v2333_v31, %v2333_v31  ;;  %v2331_v39 = vmax.f32 %v1545_v32, 0.0  ;;  %v1556_v40 = vadd.f32 %v4582_v37, %v5239_v43  ;;  %v4351_v42 = vpack.c.bf16 %v2445_v35, %v2445_v35 }
 0x129   : > { %3561 = vst.msk [vmem:[%s5254_s8 + $0x244] sm:$0xf] %vm3415_vm3, %v4346_v34  ;;  %v2443_v44 = vmax.f32 %v1993_v36, 0.0  ;;  %v2004_v45 = vadd.f32 %v4694_v41, %v5239_v43  ;;  %v1547_v46 = vpop.f32.mrf.mxu0  ;;  %v1995_v50 = vpop.f32.mrf.mxu1 }
 0x12a   : > { %3454 = vst.msk [vmem:[%s5254_s8 + $0x98] sm:$0xf] %vm3415_vm3, %v4239_v38  ;;  %v4237_v47 = vpack.c.bf16 %v2331_v39, %v2331_v39  ;;  %v2334_v48 = vmax.f32 %v1556_v40, 0.0  ;;  %v1548_v49 = vadd.f32 %v5239_v43, %v1547_v46  ;;  %3566 = vst.msk [vmem:[%s5254_s8 + $0x258] sm:$0xf] %vm3415_vm3, %v4351_v42  ;;  %v1996_v53 = vadd.f32 %v5239_v43, %v1995_v50 }
 0x12b   : > { %v4349_v51 = vpack.c.bf16 %v2443_v44, %v2443_v44  ;;  %v2446_v52 = vmax.f32 %v2004_v45, 0.0  ;;  %v4585_v54 = vpop.f32.mrf.mxu0  ;;  %v4697_v58 = vpop.f32.mrf.mxu1 }
 0x12c   : > { %3452 = vst.msk [vmem:[%s5254_s8 + $0x90] sm:$0xf] %vm3415_vm3, %v4237_v47  ;;  %v4240_v55 = vpack.c.bf16 %v2334_v48, %v2334_v48  ;;  %v2332_v56 = vmax.f32 %v1548_v49, 0.0  ;;  %v1569_v57 = vadd.f32 %v4585_v54, %v5239_v43  ;;  %v2444_v60 = vmax.f32 %v1996_v53, 0.0 }
 0x12d   : > { %3564 = vst.msk [vmem:[%s5254_s8 + $0x250] sm:$0xf] %vm3415_vm3, %v4349_v51  ;;  %v4352_v59 = vpack.c.bf16 %v2446_v52, %v2446_v52  ;;  %v2017_v61 = vadd.f32 %v4697_v58, %v5239_v43  ;;  %v1560_v62 = vpop.f32.mrf.mxu0  ;;  %v2008_v2 = vpop.f32.mrf.mxu1 }
 0x12e   : > { %3455 = vst.msk [vmem:[%s5254_s8 + $0x9c] sm:$0xf] %vm3415_vm3, %v4240_v55  ;;  %v4238_v63 = vpack.c.bf16 %v2332_v56, %v2332_v56  ;;  %v2337_v0 = vmax.f32 %v1569_v57, 0.0  ;;  %v1561_v1 = vadd.f32 %v5239_v43, %v1560_v62  ;;  %v4350_v3 = vpack.c.bf16 %v2444_v60, %v2444_v60 }
 0x12f   : > { %3567 = vst.msk [vmem:[%s5254_s8 + $0x25c] sm:$0xf] %vm3415_vm3, %v4352_v59  ;;  %v2449_v4 = vmax.f32 %v2017_v61, 0.0  ;;  %v2009_v5 = vadd.f32 %v5239_v43, %v2008_v2  ;;  %v4586_v6 = vpop.f32.mrf.mxu0  ;;  %v4698_v10 = vpop.f32.mrf.mxu1 }
 0x130   : > { %3453 = vst.msk [vmem:[%s5254_s8 + $0x94] sm:$0xf] %vm3415_vm3, %v4238_v63  ;;  %v4243_v7 = vpack.c.bf16 %v2337_v0, %v2337_v0  ;;  %v2335_v8 = vmax.f32 %v1561_v1, 0.0  ;;  %v1572_v9 = vadd.f32 %v4586_v6, %v5239_v43  ;;  %3565 = vst.msk [vmem:[%s5254_s8 + $0x254] sm:$0xf] %vm3415_vm3, %v4350_v3  ;;  %v2020_v13 = vadd.f32 %v4698_v10, %v5239_v43 }
 0x131   : > { %v4355_v11 = vpack.c.bf16 %v2449_v4, %v2449_v4  ;;  %v2447_v12 = vmax.f32 %v2009_v5, 0.0  ;;  %v1563_v14 = vpop.f32.mrf.mxu0  ;;  %v2011_v18 = vpop.f32.mrf.mxu1  ;;  %v5563_v6 = vld [vmem:[%s5972_s2] ss:$0 sm:$0xff] }
 0x132   : > { %3458 = vst.msk [vmem:[%s5254_s8 + $0xa8] sm:$0xf] %vm3415_vm3, %v4243_v7  ;;  %v4241_v15 = vpack.c.bf16 %v2335_v8, %v2335_v8  ;;  %v2338_v16 = vmax.f32 %v1572_v9, 0.0  ;;  %v1564_v17 = vadd.f32 %v5239_v43, %v1563_v14  ;;  %v2450_v20 = vmax.f32 %v2020_v13, 0.0 }
 0x133   : > { %3570 = vst.msk [vmem:[%s5254_s8 + $0x268] sm:$0xf] %vm3415_vm3, %v4355_v11  ;;  %v4353_v19 = vpack.c.bf16 %v2447_v12, %v2447_v12  ;;  %v2012_v21 = vadd.f32 %v5239_v43, %v2011_v18  ;;  %v4589_v22 = vpop.f32.mrf.mxu0  ;;  %v4701_v26 = vpop.f32.mrf.mxu1 }
 0x134   : > { %3456 = vst.msk [vmem:[%s5254_s8 + $0xa0] sm:$0xf] %vm3415_vm3, %v4241_v15  ;;  %v4244_v23 = vpack.c.bf16 %v2338_v16, %v2338_v16  ;;  %v2336_v24 = vmax.f32 %v1564_v17, 0.0  ;;  %v1585_v25 = vadd.f32 %v4589_v22, %v5239_v43  ;;  %v4356_v27 = vpack.c.bf16 %v2450_v20, %v2450_v20 }
 0x135   : > { %3568 = vst.msk [vmem:[%s5254_s8 + $0x260] sm:$0xf] %vm3415_vm3, %v4353_v19  ;;  %v2448_v28 = vmax.f32 %v2012_v21, 0.0  ;;  %v2033_v29 = vadd.f32 %v4701_v26, %v5239_v43  ;;  %v1576_v30 = vpop.f32.mrf.mxu0  ;;  %v2024_v34 = vpop.f32.mrf.mxu1 }
 0x136   : > { %3459 = vst.msk [vmem:[%s5254_s8 + $0xac] sm:$0xf] %vm3415_vm3, %v4244_v23  ;;  %v4242_v31 = vpack.c.bf16 %v2336_v24, %v2336_v24  ;;  %v2341_v32 = vmax.f32 %v1585_v25, 0.0  ;;  %v1577_v33 = vadd.f32 %v5239_v43, %v1576_v30  ;;  %3571 = vst.msk [vmem:[%s5254_s8 + $0x26c] sm:$0xf] %vm3415_vm3, %v4356_v27  ;;  %v2025_v37 = vadd.f32 %v5239_v43, %v2024_v34 }
 0x137   : > { %v4354_v35 = vpack.c.bf16 %v2448_v28, %v2448_v28  ;;  %v2453_v36 = vmax.f32 %v2033_v29, 0.0  ;;  %v4590_v38 = vpop.f32.mrf.mxu0  ;;  %v4702_v42 = vpop.f32.mrf.mxu1 }
 0x138   : > { %3457 = vst.msk [vmem:[%s5254_s8 + $0xa4] sm:$0xf] %vm3415_vm3, %v4242_v31  ;;  %v4247_v39 = vpack.c.bf16 %v2341_v32, %v2341_v32  ;;  %v2339_v40 = vmax.f32 %v1577_v33, 0.0  ;;  %v1588_v41 = vadd.f32 %v4590_v38, %v5239_v43  ;;  %v2451_v45 = vmax.f32 %v2025_v37, 0.0 }
 0x139   : > { %3569 = vst.msk [vmem:[%s5254_s8 + $0x264] sm:$0xf] %vm3415_vm3, %v4354_v35  ;;  %v4359_v44 = vpack.c.bf16 %v2453_v36, %v2453_v36  ;;  %v2036_v46 = vadd.f32 %v4702_v42, %v5239_v43  ;;  %v1579_v47 = vpop.f32.mrf.mxu0  ;;  %v2027_v51 = vpop.f32.mrf.mxu1 }
 0x13a   : > { %3462 = vst.msk [vmem:[%s5254_s8 + $0xb8] sm:$0xf] %vm3415_vm3, %v4247_v39  ;;  %v4245_v48 = vpack.c.bf16 %v2339_v40, %v2339_v40  ;;  %v2342_v49 = vmax.f32 %v1588_v41, 0.0  ;;  %v1580_v50 = vadd.f32 %v5239_v43, %v1579_v47  ;;  %v4357_v52 = vpack.c.bf16 %v2451_v45, %v2451_v45 }
 0x13b   : > { %3574 = vst.msk [vmem:[%s5254_s8 + $0x278] sm:$0xf] %vm3415_vm3, %v4359_v44  ;;  %v2454_v53 = vmax.f32 %v2036_v46, 0.0  ;;  %v2028_v54 = vadd.f32 %v5239_v43, %v2027_v51  ;;  %v4593_v55 = vpop.f32.mrf.mxu0  ;;  %v4705_v59 = vpop.f32.mrf.mxu1 }
 0x13c   : > { %3460 = vst.msk [vmem:[%s5254_s8 + $0xb0] sm:$0xf] %vm3415_vm3, %v4245_v48  ;;  %v4248_v56 = vpack.c.bf16 %v2342_v49, %v2342_v49  ;;  %v2340_v57 = vmax.f32 %v1580_v50, 0.0  ;;  %v1601_v58 = vadd.f32 %v4593_v55, %v5239_v43  ;;  %3572 = vst.msk [vmem:[%s5254_s8 + $0x270] sm:$0xf] %vm3415_vm3, %v4357_v52  ;;  %v2049_v62 = vadd.f32 %v4705_v59, %v5239_v43 }
 0x13d   : > { %v4360_v60 = vpack.c.bf16 %v2454_v53, %v2454_v53  ;;  %v2452_v61 = vmax.f32 %v2028_v54, 0.0  ;;  %v1592_v63 = vpop.f32.mrf.mxu0  ;;  %v2040_v3 = vpop.f32.mrf.mxu1 }
 0x13e   : > { %3463 = vst.msk [vmem:[%s5254_s8 + $0xbc] sm:$0xf] %vm3415_vm3, %v4248_v56  ;;  %v4246_v0 = vpack.c.bf16 %v2340_v57, %v2340_v57  ;;  %v2345_v1 = vmax.f32 %v1601_v58, 0.0  ;;  %v1593_v2 = vadd.f32 %v5239_v43, %v1592_v63  ;;  %v2457_v5 = vmax.f32 %v2049_v62, 0.0 }
 0x13f   : > { %3575 = vst.msk [vmem:[%s5254_s8 + $0x27c] sm:$0xf] %vm3415_vm3, %v4360_v60  ;;  %v4358_v4 = vpack.c.bf16 %v2452_v61, %v2452_v61  ;;  %v2041_v7 = vadd.f32 %v5563_v6, %v2040_v3  ;;  %v4594_v8 = vpop.f32.mrf.mxu0  ;;  %v4706_v11 = vpop.f32.mrf.mxu1 }
 0x140   : > { %3461 = vst.msk [vmem:[%s5254_s8 + $0xb4] sm:$0xf] %vm3415_vm3, %v4246_v0  ;;  %v4251_v9 = vpack.c.bf16 %v2345_v1, %v2345_v1  ;;  %v2343_v10 = vmax.f32 %v1593_v2, 0.0  ;;  %v1604_v43 = vadd.f32 %v5563_v6, %v4594_v8  ;;  %v4363_v12 = vpack.c.bf16 %v2457_v5, %v2457_v5 }
 0x141   : > { %3573 = vst.msk [vmem:[%s5254_s8 + $0x274] sm:$0xf] %vm3415_vm3, %v4358_v4  ;;  %v2455_v13 = vmax.f32 %v2041_v7, 0.0  ;;  %v2052_v14 = vadd.f32 %v5563_v6, %v4706_v11  ;;  %v1595_v15 = vpop.f32.mrf.mxu0  ;;  %v2043_v19 = vpop.f32.mrf.mxu1 }
 0x142   : > { %3466 = vst.msk [vmem:[%s5254_s8 + $0xc8] sm:$0xf] %vm3415_vm3, %v4251_v9  ;;  %v4249_v16 = vpack.c.bf16 %v2343_v10, %v2343_v10  ;;  %v2346_v17 = vmax.f32 %v1604_v43, 0.0  ;;  %v1596_v18 = vadd.f32 %v5563_v6, %v1595_v15  ;;  %3578 = vst.msk [vmem:[%s5254_s8 + $0x288] sm:$0xf] %vm3415_vm3, %v4363_v12  ;;  %v2044_v22 = vadd.f32 %v5563_v6, %v2043_v19 }
 0x143   : > { %v4361_v20 = vpack.c.bf16 %v2455_v13, %v2455_v13  ;;  %v2458_v21 = vmax.f32 %v2052_v14, 0.0  ;;  %v4597_v23 = vpop.f32.mrf.mxu0  ;;  %v4709_v27 = vpop.f32.mrf.mxu1 }
 0x144   : > { %3464 = vst.msk [vmem:[%s5254_s8 + $0xc0] sm:$0xf] %vm3415_vm3, %v4249_v16  ;;  %v4252_v24 = vpack.c.bf16 %v2346_v17, %v2346_v17  ;;  %v2344_v25 = vmax.f32 %v1596_v18, 0.0  ;;  %v1617_v26 = vadd.f32 %v5563_v6, %v4597_v23  ;;  %v2456_v29 = vmax.f32 %v2044_v22, 0.0 }
 0x145   : > { %3576 = vst.msk [vmem:[%s5254_s8 + $0x280] sm:$0xf] %vm3415_vm3, %v4361_v20  ;;  %v4364_v28 = vpack.c.bf16 %v2458_v21, %v2458_v21  ;;  %v2065_v30 = vadd.f32 %v5563_v6, %v4709_v27  ;;  %v1608_v31 = vpop.f32.mrf.mxu0  ;;  %v2056_v35 = vpop.f32.mrf.mxu1 }
 0x146   : > { %3467 = vst.msk [vmem:[%s5254_s8 + $0xcc] sm:$0xf] %vm3415_vm3, %v4252_v24  ;;  %v4250_v32 = vpack.c.bf16 %v2344_v25, %v2344_v25  ;;  %v2349_v33 = vmax.f32 %v1617_v26, 0.0  ;;  %v1609_v34 = vadd.f32 %v5563_v6, %v1608_v31  ;;  %v4362_v36 = vpack.c.bf16 %v2456_v29, %v2456_v29 }
 0x147   : > { %3579 = vst.msk [vmem:[%s5254_s8 + $0x28c] sm:$0xf] %vm3415_vm3, %v4364_v28  ;;  %v2461_v37 = vmax.f32 %v2065_v30, 0.0  ;;  %v2057_v38 = vadd.f32 %v5563_v6, %v2056_v35  ;;  %v4598_v39 = vpop.f32.mrf.mxu0  ;;  %v4710_v44 = vpop.f32.mrf.mxu1 }
 0x148   : > { %3465 = vst.msk [vmem:[%s5254_s8 + $0xc4] sm:$0xf] %vm3415_vm3, %v4250_v32  ;;  %v4255_v40 = vpack.c.bf16 %v2349_v33, %v2349_v33  ;;  %v2347_v41 = vmax.f32 %v1609_v34, 0.0  ;;  %v1620_v42 = vadd.f32 %v5563_v6, %v4598_v39  ;;  %3577 = vst.msk [vmem:[%s5254_s8 + $0x284] sm:$0xf] %vm3415_vm3, %v4362_v36  ;;  %v2068_v47 = vadd.f32 %v5563_v6, %v4710_v44 }
 0x149   : > { %v4367_v45 = vpack.c.bf16 %v2461_v37, %v2461_v37  ;;  %v2459_v46 = vmax.f32 %v2057_v38, 0.0  ;;  %v1611_v48 = vpop.f32.mrf.mxu0  ;;  %v2059_v52 = vpop.f32.mrf.mxu1 }
 0x14a   : > { %3470 = vst.msk [vmem:[%s5254_s8 + $0xd8] sm:$0xf] %vm3415_vm3, %v4255_v40  ;;  %v4253_v49 = vpack.c.bf16 %v2347_v41, %v2347_v41  ;;  %v2350_v50 = vmax.f32 %v1620_v42, 0.0  ;;  %v1612_v51 = vadd.f32 %v5563_v6, %v1611_v48  ;;  %v2462_v54 = vmax.f32 %v2068_v47, 0.0 }
 0x14b   : > { %3582 = vst.msk [vmem:[%s5254_s8 + $0x298] sm:$0xf] %vm3415_vm3, %v4367_v45  ;;  %v4365_v53 = vpack.c.bf16 %v2459_v46, %v2459_v46  ;;  %v2060_v55 = vadd.f32 %v5563_v6, %v2059_v52  ;;  %v4601_v56 = vpop.f32.mrf.mxu0  ;;  %v4713_v60 = vpop.f32.mrf.mxu1 }
 0x14c   : > { %3468 = vst.msk [vmem:[%s5254_s8 + $0xd0] sm:$0xf] %vm3415_vm3, %v4253_v49  ;;  %v4256_v57 = vpack.c.bf16 %v2350_v50, %v2350_v50  ;;  %v2348_v58 = vmax.f32 %v1612_v51, 0.0  ;;  %v1633_v59 = vadd.f32 %v5563_v6, %v4601_v56  ;;  %v4368_v61 = vpack.c.bf16 %v2462_v54, %v2462_v54 }
 0x14d   : > { %3580 = vst.msk [vmem:[%s5254_s8 + $0x290] sm:$0xf] %vm3415_vm3, %v4365_v53  ;;  %v2460_v62 = vmax.f32 %v2060_v55, 0.0  ;;  %v2081_v63 = vadd.f32 %v5563_v6, %v4713_v60  ;;  %v1624_v0 = vpop.f32.mrf.mxu0  ;;  %v2072_v4 = vpop.f32.mrf.mxu1 }
 0x14e   : > { %3471 = vst.msk [vmem:[%s5254_s8 + $0xdc] sm:$0xf] %vm3415_vm3, %v4256_v57  ;;  %v4254_v1 = vpack.c.bf16 %v2348_v58, %v2348_v58  ;;  %v2353_v2 = vmax.f32 %v1633_v59, 0.0  ;;  %v1625_v3 = vadd.f32 %v5563_v6, %v1624_v0  ;;  %3583 = vst.msk [vmem:[%s5254_s8 + $0x29c] sm:$0xf] %vm3415_vm3, %v4368_v61  ;;  %v2073_v8 = vadd.f32 %v5563_v6, %v2072_v4 }
 0x14f   : > { %v4366_v5 = vpack.c.bf16 %v2460_v62, %v2460_v62  ;;  %v2465_v7 = vmax.f32 %v2081_v63, 0.0  ;;  %v4602_v9 = vpop.f32.mrf.mxu0  ;;  %v4714_v12 = vpop.f32.mrf.mxu1 }
 0x150   : > { %3469 = vst.msk [vmem:[%s5254_s8 + $0xd4] sm:$0xf] %vm3415_vm3, %v4254_v1  ;;  %v4259_v10 = vpack.c.bf16 %v2353_v2, %v2353_v2  ;;  %v2351_v43 = vmax.f32 %v1625_v3, 0.0  ;;  %v1636_v11 = vadd.f32 %v5563_v6, %v4602_v9  ;;  %v2463_v14 = vmax.f32 %v2073_v8, 0.0 }
 0x151   : > { %3581 = vst.msk [vmem:[%s5254_s8 + $0x294] sm:$0xf] %vm3415_vm3, %v4366_v5  ;;  %v4371_v13 = vpack.c.bf16 %v2465_v7, %v2465_v7  ;;  %v2084_v15 = vadd.f32 %v5563_v6, %v4714_v12  ;;  %v1627_v16 = vpop.f32.mrf.mxu0  ;;  %v2075_v20 = vpop.f32.mrf.mxu1 }
 0x152   : > { %3474 = vst.msk [vmem:[%s5254_s8 + $0xe8] sm:$0xf] %vm3415_vm3, %v4259_v10  ;;  %v4257_v17 = vpack.c.bf16 %v2351_v43, %v2351_v43  ;;  %v2354_v18 = vmax.f32 %v1636_v11, 0.0  ;;  %v1628_v19 = vadd.f32 %v5563_v6, %v1627_v16  ;;  %v4369_v21 = vpack.c.bf16 %v2463_v14, %v2463_v14 }
 0x153   : > { %3586 = vst.msk [vmem:[%s5254_s8 + $0x2a8] sm:$0xf] %vm3415_vm3, %v4371_v13  ;;  %v2466_v22 = vmax.f32 %v2084_v15, 0.0  ;;  %v2076_v23 = vadd.f32 %v5563_v6, %v2075_v20  ;;  %v4605_v24 = vpop.f32.mrf.mxu0  ;;  %v4717_v28 = vpop.f32.mrf.mxu1 }
 0x154   : > { %3472 = vst.msk [vmem:[%s5254_s8 + $0xe0] sm:$0xf] %vm3415_vm3, %v4257_v17  ;;  %v4260_v25 = vpack.c.bf16 %v2354_v18, %v2354_v18  ;;  %v2352_v26 = vmax.f32 %v1628_v19, 0.0  ;;  %v1649_v27 = vadd.f32 %v5563_v6, %v4605_v24  ;;  %3584 = vst.msk [vmem:[%s5254_s8 + $0x2a0] sm:$0xf] %vm3415_vm3, %v4369_v21  ;;  %v2097_v31 = vadd.f32 %v5563_v6, %v4717_v28 }
 0x155   : > { %v4372_v29 = vpack.c.bf16 %v2466_v22, %v2466_v22  ;;  %v2464_v30 = vmax.f32 %v2076_v23, 0.0  ;;  %v1640_v32 = vpop.f32.mrf.mxu0  ;;  %v2088_v36 = vpop.f32.mrf.mxu1 }
 0x156   : > { %3475 = vst.msk [vmem:[%s5254_s8 + $0xec] sm:$0xf] %vm3415_vm3, %v4260_v25  ;;  %v4258_v33 = vpack.c.bf16 %v2352_v26, %v2352_v26  ;;  %v2357_v34 = vmax.f32 %v1649_v27, 0.0  ;;  %v1641_v35 = vadd.f32 %v5563_v6, %v1640_v32  ;;  %v2469_v38 = vmax.f32 %v2097_v31, 0.0 }
 0x157   : > { %3587 = vst.msk [vmem:[%s5254_s8 + $0x2ac] sm:$0xf] %vm3415_vm3, %v4372_v29  ;;  %v4370_v37 = vpack.c.bf16 %v2464_v30, %v2464_v30  ;;  %v2089_v39 = vadd.f32 %v5563_v6, %v2088_v36  ;;  %v4606_v40 = vpop.f32.mrf.mxu0  ;;  %v4718_v45 = vpop.f32.mrf.mxu1 }
 0x158   : > { %3473 = vst.msk [vmem:[%s5254_s8 + $0xe4] sm:$0xf] %vm3415_vm3, %v4258_v33  ;;  %v4263_v41 = vpack.c.bf16 %v2357_v34, %v2357_v34  ;;  %v2355_v42 = vmax.f32 %v1641_v35, 0.0  ;;  %v1652_v44 = vadd.f32 %v5563_v6, %v4606_v40  ;;  %v4375_v46 = vpack.c.bf16 %v2469_v38, %v2469_v38 }
 0x159   : > { %3585 = vst.msk [vmem:[%s5254_s8 + $0x2a4] sm:$0xf] %vm3415_vm3, %v4370_v37  ;;  %v2467_v47 = vmax.f32 %v2089_v39, 0.0  ;;  %v2100_v48 = vadd.f32 %v5563_v6, %v4718_v45  ;;  %v1643_v49 = vpop.f32.mrf.mxu0  ;;  %v2091_v53 = vpop.f32.mrf.mxu1 }
 0x15a   : > { %3478 = vst.msk [vmem:[%s5254_s8 + $0xf8] sm:$0xf] %vm3415_vm3, %v4263_v41  ;;  %v4261_v50 = vpack.c.bf16 %v2355_v42, %v2355_v42  ;;  %v2358_v51 = vmax.f32 %v1652_v44, 0.0  ;;  %v1644_v52 = vadd.f32 %v5563_v6, %v1643_v49  ;;  %3590 = vst.msk [vmem:[%s5254_s8 + $0x2b8] sm:$0xf] %vm3415_vm3, %v4375_v46  ;;  %v2092_v56 = vadd.f32 %v5563_v6, %v2091_v53 }
 0x15b   : > { %v4373_v54 = vpack.c.bf16 %v2467_v47, %v2467_v47  ;;  %v2470_v55 = vmax.f32 %v2100_v48, 0.0  ;;  %v4609_v57 = vpop.f32.mrf.mxu0  ;;  %v4721_v61 = vpop.f32.mrf.mxu1 }
 0x15c   : > { %3476 = vst.msk [vmem:[%s5254_s8 + $0xf0] sm:$0xf] %vm3415_vm3, %v4261_v50  ;;  %v4264_v58 = vpack.c.bf16 %v2358_v51, %v2358_v51  ;;  %v2356_v59 = vmax.f32 %v1644_v52, 0.0  ;;  %v1665_v60 = vadd.f32 %v5563_v6, %v4609_v57  ;;  %v2468_v63 = vmax.f32 %v2092_v56, 0.0 }
 0x15d   : > { %3588 = vst.msk [vmem:[%s5254_s8 + $0x2b0] sm:$0xf] %vm3415_vm3, %v4373_v54  ;;  %v4376_v62 = vpack.c.bf16 %v2470_v55, %v2470_v55  ;;  %v2113_v0 = vadd.f32 %v5563_v6, %v4721_v61  ;;  %v1656_v1 = vpop.f32.mrf.mxu0  ;;  %v2104_v5 = vpop.f32.mrf.mxu1 }
 0x15e   : > { %3479 = vst.msk [vmem:[%s5254_s8 + $0xfc] sm:$0xf] %vm3415_vm3, %v4264_v58  ;;  %v4262_v2 = vpack.c.bf16 %v2356_v59, %v2356_v59  ;;  %v2361_v3 = vmax.f32 %v1665_v60, 0.0  ;;  %v1657_v4 = vadd.f32 %v5563_v6, %v1656_v1  ;;  %v4374_v7 = vpack.c.bf16 %v2468_v63, %v2468_v63 }
 0x15f   : > { %3591 = vst.msk [vmem:[%s5254_s8 + $0x2bc] sm:$0xf] %vm3415_vm3, %v4376_v62  ;;  %v2473_v8 = vmax.f32 %v2113_v0, 0.0  ;;  %v2105_v9 = vadd.f32 %v5563_v6, %v2104_v5  ;;  %v4610_v10 = vpop.f32.mrf.mxu0  ;;  %v4722_v13 = vpop.f32.mrf.mxu1 }
 0x160   : > { %3477 = vst.msk [vmem:[%s5254_s8 + $0xf4] sm:$0xf] %vm3415_vm3, %v4262_v2  ;;  %v4267_v43 = vpack.c.bf16 %v2361_v3, %v2361_v3  ;;  %v2359_v11 = vmax.f32 %v1657_v4, 0.0  ;;  %v1668_v12 = vadd.f32 %v5563_v6, %v4610_v10  ;;  %3589 = vst.msk [vmem:[%s5254_s8 + $0x2b4] sm:$0xf] %vm3415_vm3, %v4374_v7  ;;  %v2116_v16 = vadd.f32 %v5563_v6, %v4722_v13 }
 0x161   : > { %v4379_v14 = vpack.c.bf16 %v2473_v8, %v2473_v8  ;;  %v2471_v15 = vmax.f32 %v2105_v9, 0.0  ;;  %v1659_v17 = vpop.f32.mrf.mxu0  ;;  %v2107_v21 = vpop.f32.mrf.mxu1 }
 0x162   : > { %3482 = vst.msk [vmem:[%s5254_s8 + $0x108] sm:$0xf] %vm3415_vm3, %v4267_v43  ;;  %v4265_v18 = vpack.c.bf16 %v2359_v11, %v2359_v11  ;;  %v2362_v19 = vmax.f32 %v1668_v12, 0.0  ;;  %v1660_v20 = vadd.f32 %v5563_v6, %v1659_v17  ;;  %v2474_v23 = vmax.f32 %v2116_v16, 0.0 }
 0x163   : > { %3594 = vst.msk [vmem:[%s5254_s8 + $0x2c8] sm:$0xf] %vm3415_vm3, %v4379_v14  ;;  %v4377_v22 = vpack.c.bf16 %v2471_v15, %v2471_v15  ;;  %v2108_v24 = vadd.f32 %v5563_v6, %v2107_v21  ;;  %v4613_v25 = vpop.f32.mrf.mxu0  ;;  %v4725_v29 = vpop.f32.mrf.mxu1 }
 0x164   : > { %3480 = vst.msk [vmem:[%s5254_s8 + $0x100] sm:$0xf] %vm3415_vm3, %v4265_v18  ;;  %v4268_v26 = vpack.c.bf16 %v2362_v19, %v2362_v19  ;;  %v2360_v27 = vmax.f32 %v1660_v20, 0.0  ;;  %v1681_v28 = vadd.f32 %v5563_v6, %v4613_v25  ;;  %v4380_v30 = vpack.c.bf16 %v2474_v23, %v2474_v23 }
 0x165   : > { %3592 = vst.msk [vmem:[%s5254_s8 + $0x2c0] sm:$0xf] %vm3415_vm3, %v4377_v22  ;;  %v2472_v31 = vmax.f32 %v2108_v24, 0.0  ;;  %v2129_v32 = vadd.f32 %v5563_v6, %v4725_v29  ;;  %v1672_v33 = vpop.f32.mrf.mxu0  ;;  %v2120_v37 = vpop.f32.mrf.mxu1 }
 0x166   : > { %3483 = vst.msk [vmem:[%s5254_s8 + $0x10c] sm:$0xf] %vm3415_vm3, %v4268_v26  ;;  %v4266_v34 = vpack.c.bf16 %v2360_v27, %v2360_v27  ;;  %v2365_v35 = vmax.f32 %v1681_v28, 0.0  ;;  %v1673_v36 = vadd.f32 %v5563_v6, %v1672_v33  ;;  %3595 = vst.msk [vmem:[%s5254_s8 + $0x2cc] sm:$0xf] %vm3415_vm3, %v4380_v30  ;;  %v2121_v40 = vadd.f32 %v5563_v6, %v2120_v37 }
 0x167   : > { %v4378_v38 = vpack.c.bf16 %v2472_v31, %v2472_v31  ;;  %v2477_v39 = vmax.f32 %v2129_v32, 0.0  ;;  %v4614_v41 = vpop.f32.mrf.mxu0  ;;  %v4726_v46 = vpop.f32.mrf.mxu1 }
 0x168   : > { %3481 = vst.msk [vmem:[%s5254_s8 + $0x104] sm:$0xf] %vm3415_vm3, %v4266_v34  ;;  %v4271_v42 = vpack.c.bf16 %v2365_v35, %v2365_v35  ;;  %v2363_v44 = vmax.f32 %v1673_v36, 0.0  ;;  %v1684_v45 = vadd.f32 %v5563_v6, %v4614_v41  ;;  %v2475_v48 = vmax.f32 %v2121_v40, 0.0 }
 0x169   : > { %3593 = vst.msk [vmem:[%s5254_s8 + $0x2c4] sm:$0xf] %vm3415_vm3, %v4378_v38  ;;  %v4383_v47 = vpack.c.bf16 %v2477_v39, %v2477_v39  ;;  %v2132_v49 = vadd.f32 %v5563_v6, %v4726_v46  ;;  %v1675_v50 = vpop.f32.mrf.mxu0  ;;  %v2123_v54 = vpop.f32.mrf.mxu1 }
 0x16a   : > { %3486 = vst.msk [vmem:[%s5254_s8 + $0x118] sm:$0xf] %vm3415_vm3, %v4271_v42  ;;  %v4269_v51 = vpack.c.bf16 %v2363_v44, %v2363_v44  ;;  %v2366_v52 = vmax.f32 %v1684_v45, 0.0  ;;  %v1676_v53 = vadd.f32 %v5563_v6, %v1675_v50  ;;  %v4381_v55 = vpack.c.bf16 %v2475_v48, %v2475_v48 }
 0x16b   : > { %3598 = vst.msk [vmem:[%s5254_s8 + $0x2d8] sm:$0xf] %vm3415_vm3, %v4383_v47  ;;  %v2478_v56 = vmax.f32 %v2132_v49, 0.0  ;;  %v2124_v57 = vadd.f32 %v5563_v6, %v2123_v54  ;;  %v4617_v58 = vpop.f32.mrf.mxu0  ;;  %v4729_v62 = vpop.f32.mrf.mxu1 }
 0x16c   : > { %3484 = vst.msk [vmem:[%s5254_s8 + $0x110] sm:$0xf] %vm3415_vm3, %v4269_v51  ;;  %v4272_v59 = vpack.c.bf16 %v2366_v52, %v2366_v52  ;;  %v2364_v60 = vmax.f32 %v1676_v53, 0.0  ;;  %v1697_v61 = vadd.f32 %v5563_v6, %v4617_v58  ;;  %3596 = vst.msk [vmem:[%s5254_s8 + $0x2d0] sm:$0xf] %vm3415_vm3, %v4381_v55  ;;  %v2145_v1 = vadd.f32 %v5563_v6, %v4729_v62 }
 0x16d   : > { %v4384_v63 = vpack.c.bf16 %v2478_v56, %v2478_v56  ;;  %v2476_v0 = vmax.f32 %v2124_v57, 0.0  ;;  %v1688_v2 = vpop.f32.mrf.mxu0  ;;  %v2136_v7 = vpop.f32.mrf.mxu1 }
 0x16e   : > { %3487 = vst.msk [vmem:[%s5254_s8 + $0x11c] sm:$0xf] %vm3415_vm3, %v4272_v59  ;;  %v4270_v3 = vpack.c.bf16 %v2364_v60, %v2364_v60  ;;  %v2369_v4 = vmax.f32 %v1697_v61, 0.0  ;;  %v1689_v5 = vadd.f32 %v5563_v6, %v1688_v2  ;;  %v2481_v9 = vmax.f32 %v2145_v1, 0.0 }
 0x16f   : > { %3599 = vst.msk [vmem:[%s5254_s8 + $0x2dc] sm:$0xf] %vm3415_vm3, %v4384_v63  ;;  %v4382_v8 = vpack.c.bf16 %v2476_v0, %v2476_v0  ;;  %v2137_v10 = vadd.f32 %v5563_v6, %v2136_v7  ;;  %v4618_v43 = vpop.f32.mrf.mxu0  ;;  %v4730_v14 = vpop.f32.mrf.mxu1 }
 0x170   : > { %3485 = vst.msk [vmem:[%s5254_s8 + $0x114] sm:$0xf] %vm3415_vm3, %v4270_v3  ;;  %v4275_v11 = vpack.c.bf16 %v2369_v4, %v2369_v4  ;;  %v2367_v12 = vmax.f32 %v1689_v5, 0.0  ;;  %v1700_v13 = vadd.f32 %v5563_v6, %v4618_v43  ;;  %v4387_v15 = vpack.c.bf16 %v2481_v9, %v2481_v9 }
 0x171   : > { %3597 = vst.msk [vmem:[%s5254_s8 + $0x2d4] sm:$0xf] %vm3415_vm3, %v4382_v8  ;;  %v2479_v16 = vmax.f32 %v2137_v10, 0.0  ;;  %v2148_v17 = vadd.f32 %v5563_v6, %v4730_v14  ;;  %v1691_v18 = vpop.f32.mrf.mxu0  ;;  %v2139_v22 = vpop.f32.mrf.mxu1 }
 0x172   : > { %3490 = vst.msk [vmem:[%s5254_s8 + $0x128] sm:$0xf] %vm3415_vm3, %v4275_v11  ;;  %v4273_v19 = vpack.c.bf16 %v2367_v12, %v2367_v12  ;;  %v2370_v20 = vmax.f32 %v1700_v13, 0.0  ;;  %v1692_v21 = vadd.f32 %v5563_v6, %v1691_v18  ;;  %3602 = vst.msk [vmem:[%s5254_s8 + $0x2e8] sm:$0xf] %vm3415_vm3, %v4387_v15  ;;  %v2140_v25 = vadd.f32 %v5563_v6, %v2139_v22 }
 0x173   : > { %v4385_v23 = vpack.c.bf16 %v2479_v16, %v2479_v16  ;;  %v2482_v24 = vmax.f32 %v2148_v17, 0.0  ;;  %v4621_v26 = vpop.f32.mrf.mxu0  ;;  %v4733_v30 = vpop.f32.mrf.mxu1 }
 0x174   : > { %3488 = vst.msk [vmem:[%s5254_s8 + $0x120] sm:$0xf] %vm3415_vm3, %v4273_v19  ;;  %v4276_v27 = vpack.c.bf16 %v2370_v20, %v2370_v20  ;;  %v2368_v28 = vmax.f32 %v1692_v21, 0.0  ;;  %v1713_v29 = vadd.f32 %v5563_v6, %v4621_v26  ;;  %v2480_v32 = vmax.f32 %v2140_v25, 0.0 }
 0x175   : > { %3600 = vst.msk [vmem:[%s5254_s8 + $0x2e0] sm:$0xf] %vm3415_vm3, %v4385_v23  ;;  %v4388_v31 = vpack.c.bf16 %v2482_v24, %v2482_v24  ;;  %v2161_v33 = vadd.f32 %v5563_v6, %v4733_v30  ;;  %v1704_v34 = vpop.f32.mrf.mxu0  ;;  %v2152_v38 = vpop.f32.mrf.mxu1 }
 0x176   : > { %3491 = vst.msk [vmem:[%s5254_s8 + $0x12c] sm:$0xf] %vm3415_vm3, %v4276_v27  ;;  %v4274_v35 = vpack.c.bf16 %v2368_v28, %v2368_v28  ;;  %v2373_v36 = vmax.f32 %v1713_v29, 0.0  ;;  %v1705_v37 = vadd.f32 %v5563_v6, %v1704_v34  ;;  %v4386_v39 = vpack.c.bf16 %v2480_v32, %v2480_v32 }
 0x177   : > { %3603 = vst.msk [vmem:[%s5254_s8 + $0x2ec] sm:$0xf] %vm3415_vm3, %v4388_v31  ;;  %v2485_v40 = vmax.f32 %v2161_v33, 0.0  ;;  %v2153_v41 = vadd.f32 %v5563_v6, %v2152_v38  ;;  %v4622_v42 = vpop.f32.mrf.mxu0  ;;  %v4734_v47 = vpop.f32.mrf.mxu1 }
 0x178   : > { %3489 = vst.msk [vmem:[%s5254_s8 + $0x124] sm:$0xf] %vm3415_vm3, %v4274_v35  ;;  %v4279_v44 = vpack.c.bf16 %v2373_v36, %v2373_v36  ;;  %v2371_v45 = vmax.f32 %v1705_v37, 0.0  ;;  %v1716_v46 = vadd.f32 %v5563_v6, %v4622_v42  ;;  %3601 = vst.msk [vmem:[%s5254_s8 + $0x2e4] sm:$0xf] %vm3415_vm3, %v4386_v39  ;;  %v2164_v50 = vadd.f32 %v5563_v6, %v4734_v47 }
 0x179   : > { %v4391_v48 = vpack.c.bf16 %v2485_v40, %v2485_v40  ;;  %v2483_v49 = vmax.f32 %v2153_v41, 0.0  ;;  %v1707_v51 = vpop.f32.mrf.mxu0  ;;  %v2155_v55 = vpop.f32.mrf.mxu1 }
 0x17a   : > { %3494 = vst.msk [vmem:[%s5254_s8 + $0x138] sm:$0xf] %vm3415_vm3, %v4279_v44  ;;  %v4277_v52 = vpack.c.bf16 %v2371_v45, %v2371_v45  ;;  %v2374_v53 = vmax.f32 %v1716_v46, 0.0  ;;  %v1708_v54 = vadd.f32 %v5563_v6, %v1707_v51  ;;  %v2486_v57 = vmax.f32 %v2164_v50, 0.0 }
 0x17b   : > { %3606 = vst.msk [vmem:[%s5254_s8 + $0x2f8] sm:$0xf] %vm3415_vm3, %v4391_v48  ;;  %v4389_v56 = vpack.c.bf16 %v2483_v49, %v2483_v49  ;;  %v2156_v58 = vadd.f32 %v5563_v6, %v2155_v55  ;;  %v4625_v59 = vpop.f32.mrf.mxu0  ;;  %v4737_v63 = vpop.f32.mrf.mxu1 }
 0x17c   : > { %3492 = vst.msk [vmem:[%s5254_s8 + $0x130] sm:$0xf] %vm3415_vm3, %v4277_v52  ;;  %v4280_v60 = vpack.c.bf16 %v2374_v53, %v2374_v53  ;;  %v2372_v61 = vmax.f32 %v1708_v54, 0.0  ;;  %v1729_v62 = vadd.f32 %v5563_v6, %v4625_v59  ;;  %v4392_v0 = vpack.c.bf16 %v2486_v57, %v2486_v57 }
 0x17d   : > { %3604 = vst.msk [vmem:[%s5254_s8 + $0x2f0] sm:$0xf] %vm3415_vm3, %v4389_v56  ;;  %v2484_v1 = vmax.f32 %v2156_v58, 0.0  ;;  %v2177_v2 = vadd.f32 %v5563_v6, %v4737_v63  ;;  %v1720_v3 = vpop.f32.mrf.mxu0  ;;  %v2168_v8 = vpop.f32.mrf.mxu1 }
 0x17e   : > { %3495 = vst.msk [vmem:[%s5254_s8 + $0x13c] sm:$0xf] %vm3415_vm3, %v4280_v60  ;;  %v4278_v4 = vpack.c.bf16 %v2372_v61, %v2372_v61  ;;  %v2377_v5 = vmax.f32 %v1729_v62, 0.0  ;;  %v1721_v7 = vadd.f32 %v5563_v6, %v1720_v3  ;;  %3607 = vst.msk [vmem:[%s5254_s8 + $0x2fc] sm:$0xf] %vm3415_vm3, %v4392_v0  ;;  %v2169_v43 = vadd.f32 %v5563_v6, %v2168_v8 }
 0x17f   : > { %v4390_v9 = vpack.c.bf16 %v2484_v1, %v2484_v1  ;;  %v2489_v10 = vmax.f32 %v2177_v2, 0.0  ;;  %v4626_v11 = vpop.f32.mrf.mxu0  ;;  %v4738_v15 = vpop.f32.mrf.mxu1 }
 0x180   : > { %3493 = vst.msk [vmem:[%s5254_s8 + $0x134] sm:$0xf] %vm3415_vm3, %v4278_v4  ;;  %v4283_v12 = vpack.c.bf16 %v2377_v5, %v2377_v5  ;;  %v2375_v13 = vmax.f32 %v1721_v7, 0.0  ;;  %v1732_v14 = vadd.f32 %v5563_v6, %v4626_v11  ;;  %v2487_v17 = vmax.f32 %v2169_v43, 0.0 }
 0x181   : > { %3605 = vst.msk [vmem:[%s5254_s8 + $0x2f4] sm:$0xf] %vm3415_vm3, %v4390_v9  ;;  %v4395_v16 = vpack.c.bf16 %v2489_v10, %v2489_v10  ;;  %v2180_v18 = vadd.f32 %v5563_v6, %v4738_v15  ;;  %v1723_v19 = vpop.f32.mrf.mxu0  ;;  %v2171_v23 = vpop.f32.mrf.mxu1 }
 0x182   : > { %3498 = vst.msk [vmem:[%s5254_s8 + $0x148] sm:$0xf] %vm3415_vm3, %v4283_v12  ;;  %v4281_v20 = vpack.c.bf16 %v2375_v13, %v2375_v13  ;;  %v2378_v21 = vmax.f32 %v1732_v14, 0.0  ;;  %v1724_v22 = vadd.f32 %v5563_v6, %v1723_v19  ;;  %v4393_v24 = vpack.c.bf16 %v2487_v17, %v2487_v17 }
 0x183   : > { %3610 = vst.msk [vmem:[%s5254_s8 + $0x308] sm:$0xf] %vm3415_vm3, %v4395_v16  ;;  %v2490_v25 = vmax.f32 %v2180_v18, 0.0  ;;  %v2172_v26 = vadd.f32 %v5563_v6, %v2171_v23  ;;  %v4629_v27 = vpop.f32.mrf.mxu0  ;;  %v4741_v31 = vpop.f32.mrf.mxu1 }
 0x184   : > { %3496 = vst.msk [vmem:[%s5254_s8 + $0x140] sm:$0xf] %vm3415_vm3, %v4281_v20  ;;  %v4284_v28 = vpack.c.bf16 %v2378_v21, %v2378_v21  ;;  %v2376_v29 = vmax.f32 %v1724_v22, 0.0  ;;  %v1745_v30 = vadd.f32 %v5563_v6, %v4629_v27  ;;  %3608 = vst.msk [vmem:[%s5254_s8 + $0x300] sm:$0xf] %vm3415_vm3, %v4393_v24  ;;  %v2193_v34 = vadd.f32 %v5563_v6, %v4741_v31 }
 0x185   : > { %v4396_v32 = vpack.c.bf16 %v2490_v25, %v2490_v25  ;;  %v2488_v33 = vmax.f32 %v2172_v26, 0.0  ;;  %v1736_v35 = vpop.f32.mrf.mxu0  ;;  %v2184_v39 = vpop.f32.mrf.mxu1 }
 0x186   : > { %3499 = vst.msk [vmem:[%s5254_s8 + $0x14c] sm:$0xf] %vm3415_vm3, %v4284_v28  ;;  %v4282_v36 = vpack.c.bf16 %v2376_v29, %v2376_v29  ;;  %v2381_v37 = vmax.f32 %v1745_v30, 0.0  ;;  %v1737_v38 = vadd.f32 %v5563_v6, %v1736_v35  ;;  %v2493_v41 = vmax.f32 %v2193_v34, 0.0 }
 0x187   : > { %3611 = vst.msk [vmem:[%s5254_s8 + $0x30c] sm:$0xf] %vm3415_vm3, %v4396_v32  ;;  %v4394_v40 = vpack.c.bf16 %v2488_v33, %v2488_v33  ;;  %v2185_v42 = vadd.f32 %v5563_v6, %v2184_v39  ;;  %v4630_v44 = vpop.f32.mrf.mxu0  ;;  %v4742_v48 = vpop.f32.mrf.mxu1 }
 0x188   : > { %3497 = vst.msk [vmem:[%s5254_s8 + $0x144] sm:$0xf] %vm3415_vm3, %v4282_v36  ;;  %v4287_v45 = vpack.c.bf16 %v2381_v37, %v2381_v37  ;;  %v2379_v46 = vmax.f32 %v1737_v38, 0.0  ;;  %v1748_v47 = vadd.f32 %v5563_v6, %v4630_v44  ;;  %v4399_v49 = vpack.c.bf16 %v2493_v41, %v2493_v41 }
 0x189   : > { %3609 = vst.msk [vmem:[%s5254_s8 + $0x304] sm:$0xf] %vm3415_vm3, %v4394_v40  ;;  %v2491_v50 = vmax.f32 %v2185_v42, 0.0  ;;  %v2196_v51 = vadd.f32 %v5563_v6, %v4742_v48  ;;  %v1739_v52 = vpop.f32.mrf.mxu0  ;;  %v2187_v56 = vpop.f32.mrf.mxu1 }
 0x18a   : > { %3502 = vst.msk [vmem:[%s5254_s8 + $0x158] sm:$0xf] %vm3415_vm3, %v4287_v45  ;;  %v4285_v53 = vpack.c.bf16 %v2379_v46, %v2379_v46  ;;  %v2382_v54 = vmax.f32 %v1748_v47, 0.0  ;;  %v1740_v55 = vadd.f32 %v5563_v6, %v1739_v52  ;;  %3614 = vst.msk [vmem:[%s5254_s8 + $0x318] sm:$0xf] %vm3415_vm3, %v4399_v49  ;;  %v2188_v59 = vadd.f32 %v5563_v6, %v2187_v56 }
 0x18b   : > { %v4397_v57 = vpack.c.bf16 %v2491_v50, %v2491_v50  ;;  %v2494_v58 = vmax.f32 %v2196_v51, 0.0  ;;  %v4633_v60 = vpop.f32.mrf.mxu0  ;;  %v4745_v0 = vpop.f32.mrf.mxu1 }
 0x18c   : > { %3500 = vst.msk [vmem:[%s5254_s8 + $0x150] sm:$0xf] %vm3415_vm3, %v4285_v53  ;;  %v4288_v61 = vpack.c.bf16 %v2382_v54, %v2382_v54  ;;  %v2380_v62 = vmax.f32 %v1740_v55, 0.0  ;;  %v1761_v63 = vadd.f32 %v5563_v6, %v4633_v60  ;;  %v2492_v2 = vmax.f32 %v2188_v59, 0.0 }
 0x18d   : > { %3612 = vst.msk [vmem:[%s5254_s8 + $0x310] sm:$0xf] %vm3415_vm3, %v4397_v57  ;;  %v4400_v1 = vpack.c.bf16 %v2494_v58, %v2494_v58  ;;  %v2209_v3 = vadd.f32 %v5563_v6, %v4745_v0  ;;  %v1752_v4 = vpop.f32.mrf.mxu0  ;;  %v2200_v9 = vpop.f32.mrf.mxu1 }
 0x18e   : > { %3503 = vst.msk [vmem:[%s5254_s8 + $0x15c] sm:$0xf] %vm3415_vm3, %v4288_v61  ;;  %v4286_v5 = vpack.c.bf16 %v2380_v62, %v2380_v62  ;;  %v2385_v7 = vmax.f32 %v1761_v63, 0.0  ;;  %v1753_v8 = vadd.f32 %v5563_v6, %v1752_v4  ;;  %v4398_v10 = vpack.c.bf16 %v2492_v2, %v2492_v2 }
 0x18f   : > { %3615 = vst.msk [vmem:[%s5254_s8 + $0x31c] sm:$0xf] %vm3415_vm3, %v4400_v1  ;;  %v2497_v43 = vmax.f32 %v2209_v3, 0.0  ;;  %v2201_v11 = vadd.f32 %v5563_v6, %v2200_v9  ;;  %v4634_v12 = vpop.f32.mrf.mxu0  ;;  %v4746_v16 = vpop.f32.mrf.mxu1 }
 0x190   : > { %3501 = vst.msk [vmem:[%s5254_s8 + $0x154] sm:$0xf] %vm3415_vm3, %v4286_v5  ;;  %v4291_v13 = vpack.c.bf16 %v2385_v7, %v2385_v7  ;;  %v2383_v14 = vmax.f32 %v1753_v8, 0.0  ;;  %v1764_v15 = vadd.f32 %v5563_v6, %v4634_v12  ;;  %3613 = vst.msk [vmem:[%s5254_s8 + $0x314] sm:$0xf] %vm3415_vm3, %v4398_v10  ;;  %v2212_v19 = vadd.f32 %v5563_v6, %v4746_v16 }
 0x191   : > { %v4403_v17 = vpack.c.bf16 %v2497_v43, %v2497_v43  ;;  %v2495_v18 = vmax.f32 %v2201_v11, 0.0  ;;  %v1755_v20 = vpop.f32.mrf.mxu0  ;;  %v2203_v24 = vpop.f32.mrf.mxu1 }
 0x192   : > { %3506 = vst.msk [vmem:[%s5254_s8 + $0x168] sm:$0xf] %vm3415_vm3, %v4291_v13  ;;  %v4289_v21 = vpack.c.bf16 %v2383_v14, %v2383_v14  ;;  %v2386_v22 = vmax.f32 %v1764_v15, 0.0  ;;  %v1756_v23 = vadd.f32 %v5563_v6, %v1755_v20  ;;  %v2498_v26 = vmax.f32 %v2212_v19, 0.0 }
 0x193   : > { %3618 = vst.msk [vmem:[%s5254_s8 + $0x328] sm:$0xf] %vm3415_vm3, %v4403_v17  ;;  %v4401_v25 = vpack.c.bf16 %v2495_v18, %v2495_v18  ;;  %v2204_v27 = vadd.f32 %v5563_v6, %v2203_v24  ;;  %v4637_v28 = vpop.f32.mrf.mxu0  ;;  %v4749_v32 = vpop.f32.mrf.mxu1 }
 0x194   : > { %3504 = vst.msk [vmem:[%s5254_s8 + $0x160] sm:$0xf] %vm3415_vm3, %v4289_v21  ;;  %v4292_v29 = vpack.c.bf16 %v2386_v22, %v2386_v22  ;;  %v2384_v30 = vmax.f32 %v1756_v23, 0.0  ;;  %v1777_v31 = vadd.f32 %v5563_v6, %v4637_v28  ;;  %v4404_v33 = vpack.c.bf16 %v2498_v26, %v2498_v26 }
 0x195   : > { %3616 = vst.msk [vmem:[%s5254_s8 + $0x320] sm:$0xf] %vm3415_vm3, %v4401_v25  ;;  %v2496_v34 = vmax.f32 %v2204_v27, 0.0  ;;  %v2225_v35 = vadd.f32 %v5563_v6, %v4749_v32  ;;  %v1768_v36 = vpop.f32.mrf.mxu0  ;;  %v2216_v40 = vpop.f32.mrf.mxu1 }
 0x196   : > { %3507 = vst.msk [vmem:[%s5254_s8 + $0x16c] sm:$0xf] %vm3415_vm3, %v4292_v29  ;;  %v4290_v37 = vpack.c.bf16 %v2384_v30, %v2384_v30  ;;  %v2389_v38 = vmax.f32 %v1777_v31, 0.0  ;;  %v1769_v39 = vadd.f32 %v5563_v6, %v1768_v36  ;;  %3619 = vst.msk [vmem:[%s5254_s8 + $0x32c] sm:$0xf] %vm3415_vm3, %v4404_v33  ;;  %v2217_v44 = vadd.f32 %v5563_v6, %v2216_v40 }
 0x197   : > { %v4402_v41 = vpack.c.bf16 %v2496_v34, %v2496_v34  ;;  %v2501_v42 = vmax.f32 %v2225_v35, 0.0  ;;  %v4638_v45 = vpop.f32.mrf.mxu0  ;;  %v4750_v49 = vpop.f32.mrf.mxu1  ;;  %v5877_v40 = vld [vmem:[%s5972_s2] ss:$0 sm:$0xff] }
 0x198   : > { %3505 = vst.msk [vmem:[%s5254_s8 + $0x164] sm:$0xf] %vm3415_vm3, %v4290_v37  ;;  %v4295_v46 = vpack.c.bf16 %v2389_v38, %v2389_v38  ;;  %v2387_v47 = vmax.f32 %v1769_v39, 0.0  ;;  %v1780_v48 = vadd.f32 %v5563_v6, %v4638_v45  ;;  %v2499_v51 = vmax.f32 %v2217_v44, 0.0 }
 0x199   : > { %3617 = vst.msk [vmem:[%s5254_s8 + $0x324] sm:$0xf] %vm3415_vm3, %v4402_v41  ;;  %v4407_v50 = vpack.c.bf16 %v2501_v42, %v2501_v42  ;;  %v2228_v52 = vadd.f32 %v5563_v6, %v4750_v49  ;;  %v1771_v53 = vpop.f32.mrf.mxu0  ;;  %v2219_v57 = vpop.f32.mrf.mxu1 }
 0x19a   : > { %3510 = vst.msk [vmem:[%s5254_s8 + $0x178] sm:$0xf] %vm3415_vm3, %v4295_v46  ;;  %v4293_v54 = vpack.c.bf16 %v2387_v47, %v2387_v47  ;;  %v2390_v55 = vmax.f32 %v1780_v48, 0.0  ;;  %v1772_v56 = vadd.f32 %v5563_v6, %v1771_v53  ;;  %v4405_v58 = vpack.c.bf16 %v2499_v51, %v2499_v51 }
 0x19b   : > { %3622 = vst.msk [vmem:[%s5254_s8 + $0x338] sm:$0xf] %vm3415_vm3, %v4407_v50  ;;  %v2502_v59 = vmax.f32 %v2228_v52, 0.0  ;;  %v2220_v60 = vadd.f32 %v5563_v6, %v2219_v57  ;;  %v4641_v61 = vpop.f32.mrf.mxu0  ;;  %v4753_v1 = vpop.f32.mrf.mxu1 }
 0x19c   : > { %3508 = vst.msk [vmem:[%s5254_s8 + $0x170] sm:$0xf] %vm3415_vm3, %v4293_v54  ;;  %v4296_v62 = vpack.c.bf16 %v2390_v55, %v2390_v55  ;;  %v2388_v63 = vmax.f32 %v1772_v56, 0.0  ;;  %v1793_v0 = vadd.f32 %v5563_v6, %v4641_v61  ;;  %3620 = vst.msk [vmem:[%s5254_s8 + $0x330] sm:$0xf] %vm3415_vm3, %v4405_v58  ;;  %v2241_v4 = vadd.f32 %v5563_v6, %v4753_v1 }
 0x19d   : > { %v4408_v2 = vpack.c.bf16 %v2502_v59, %v2502_v59  ;;  %v2500_v3 = vmax.f32 %v2220_v60, 0.0  ;;  %v1784_v5 = vpop.f32.mrf.mxu0  ;;  %v2232_v10 = vpop.f32.mrf.mxu1 }
 0x19e   : > { %3511 = vst.msk [vmem:[%s5254_s8 + $0x17c] sm:$0xf] %vm3415_vm3, %v4296_v62  ;;  %v4294_v7 = vpack.c.bf16 %v2388_v63, %v2388_v63  ;;  %v2393_v8 = vmax.f32 %v1793_v0, 0.0  ;;  %v1785_v9 = vadd.f32 %v5563_v6, %v1784_v5  ;;  %v2505_v11 = vmax.f32 %v2241_v4, 0.0 }
 0x19f   : > { %3623 = vst.msk [vmem:[%s5254_s8 + $0x33c] sm:$0xf] %vm3415_vm3, %v4408_v2  ;;  %v4406_v43 = vpack.c.bf16 %v2500_v3, %v2500_v3  ;;  %v2233_v12 = vadd.f32 %v5563_v6, %v2232_v10  ;;  %v4642_v13 = vpop.f32.mrf.mxu0  ;;  %v4754_v17 = vpop.f32.mrf.mxu1 }
 0x1a0   : > { %3509 = vst.msk [vmem:[%s5254_s8 + $0x174] sm:$0xf] %vm3415_vm3, %v4294_v7  ;;  %v4299_v14 = vpack.c.bf16 %v2393_v8, %v2393_v8  ;;  %v2391_v15 = vmax.f32 %v1785_v9, 0.0  ;;  %v1796_v16 = vadd.f32 %v5563_v6, %v4642_v13  ;;  %v4411_v18 = vpack.c.bf16 %v2505_v11, %v2505_v11 }
 0x1a1   : > { %3621 = vst.msk [vmem:[%s5254_s8 + $0x334] sm:$0xf] %vm3415_vm3, %v4406_v43  ;;  %v2503_v19 = vmax.f32 %v2233_v12, 0.0  ;;  %v2244_v20 = vadd.f32 %v5563_v6, %v4754_v17  ;;  %v1787_v21 = vpop.f32.mrf.mxu0  ;;  %v2235_v25 = vpop.f32.mrf.mxu1 }
 0x1a2   : > { %3514 = vst.msk [vmem:[%s5254_s8 + $0x188] sm:$0xf] %vm3415_vm3, %v4299_v14  ;;  %v4297_v22 = vpack.c.bf16 %v2391_v15, %v2391_v15  ;;  %v2394_v23 = vmax.f32 %v1796_v16, 0.0  ;;  %v1788_v24 = vadd.f32 %v5563_v6, %v1787_v21  ;;  %3626 = vst.msk [vmem:[%s5254_s8 + $0x348] sm:$0xf] %vm3415_vm3, %v4411_v18  ;;  %v2236_v28 = vadd.f32 %v5563_v6, %v2235_v25 }
 0x1a3   : > { %v4409_v26 = vpack.c.bf16 %v2503_v19, %v2503_v19  ;;  %v2506_v27 = vmax.f32 %v2244_v20, 0.0  ;;  %v4645_v29 = vpop.f32.mrf.mxu0  ;;  %v4757_v33 = vpop.f32.mrf.mxu1 }
 0x1a4   : > { %3512 = vst.msk [vmem:[%s5254_s8 + $0x180] sm:$0xf] %vm3415_vm3, %v4297_v22  ;;  %v4300_v30 = vpack.c.bf16 %v2394_v23, %v2394_v23  ;;  %v2392_v31 = vmax.f32 %v1788_v24, 0.0  ;;  %v1809_v32 = vadd.f32 %v5563_v6, %v4645_v29  ;;  %v2504_v35 = vmax.f32 %v2236_v28, 0.0 }
 0x1a5   : > { %3624 = vst.msk [vmem:[%s5254_s8 + $0x340] sm:$0xf] %vm3415_vm3, %v4409_v26  ;;  %v4412_v34 = vpack.c.bf16 %v2506_v27, %v2506_v27  ;;  %v2257_v36 = vadd.f32 %v5563_v6, %v4757_v33  ;;  %v1800_v37 = vpop.f32.mrf.mxu0  ;;  %v2248_v42 = vpop.f32.mrf.mxu1 }
 0x1a6   : > { %3515 = vst.msk [vmem:[%s5254_s8 + $0x18c] sm:$0xf] %vm3415_vm3, %v4300_v30  ;;  %v4298_v38 = vpack.c.bf16 %v2392_v31, %v2392_v31  ;;  %v2397_v39 = vmax.f32 %v1809_v32, 0.0  ;;  %v1801_v41 = vadd.f32 %v5877_v40, %v1800_v37  ;;  %v4410_v44 = vpack.c.bf16 %v2504_v35, %v2504_v35 }
 0x1a7   : > { %3627 = vst.msk [vmem:[%s5254_s8 + $0x34c] sm:$0xf] %vm3415_vm3, %v4412_v34  ;;  %v2509_v45 = vmax.f32 %v2257_v36, 0.0  ;;  %v2249_v6 = vadd.f32 %v5877_v40, %v2248_v42  ;;  %v4646_v46 = vpop.f32.mrf.mxu0  ;;  %v4758_v50 = vpop.f32.mrf.mxu1 }
 0x1a8   : > { %3513 = vst.msk [vmem:[%s5254_s8 + $0x184] sm:$0xf] %vm3415_vm3, %v4298_v38  ;;  %v4303_v47 = vpack.c.bf16 %v2397_v39, %v2397_v39  ;;  %v2395_v48 = vmax.f32 %v1801_v41, 0.0  ;;  %v1812_v49 = vadd.f32 %v5877_v40, %v4646_v46  ;;  %3625 = vst.msk [vmem:[%s5254_s8 + $0x344] sm:$0xf] %vm3415_vm3, %v4410_v44  ;;  %v2260_v53 = vadd.f32 %v5877_v40, %v4758_v50 }
 0x1a9   : > { %v4415_v51 = vpack.c.bf16 %v2509_v45, %v2509_v45  ;;  %v2507_v52 = vmax.f32 %v2249_v6, 0.0  ;;  %v1803_v54 = vpop.f32.mrf.mxu0  ;;  %v2251_v58 = vpop.f32.mrf.mxu1 }
 0x1aa   : > { %3518 = vst.msk [vmem:[%s5254_s8 + $0x198] sm:$0xf] %vm3415_vm3, %v4303_v47  ;;  %v4301_v55 = vpack.c.bf16 %v2395_v48, %v2395_v48  ;;  %v2398_v56 = vmax.f32 %v1812_v49, 0.0  ;;  %v1804_v57 = vadd.f32 %v5877_v40, %v1803_v54  ;;  %v2510_v60 = vmax.f32 %v2260_v53, 0.0 }
 0x1ab   : > { %3630 = vst.msk [vmem:[%s5254_s8 + $0x358] sm:$0xf] %vm3415_vm3, %v4415_v51  ;;  %v4413_v59 = vpack.c.bf16 %v2507_v52, %v2507_v52  ;;  %v2252_v61 = vadd.f32 %v5877_v40, %v2251_v58  ;;  %v4649_v62 = vpop.f32.mrf.mxu0  ;;  %v4761_v2 = vpop.f32.mrf.mxu1 }
 0x1ac   : > { %3516 = vst.msk [vmem:[%s5254_s8 + $0x190] sm:$0xf] %vm3415_vm3, %v4301_v55  ;;  %v4304_v63 = vpack.c.bf16 %v2398_v56, %v2398_v56  ;;  %v2396_v0 = vmax.f32 %v1804_v57, 0.0  ;;  %v1825_v1 = vadd.f32 %v5877_v40, %v4649_v62  ;;  %v4416_v3 = vpack.c.bf16 %v2510_v60, %v2510_v60 }
 0x1ad   : > { %3628 = vst.msk [vmem:[%s5254_s8 + $0x350] sm:$0xf] %vm3415_vm3, %v4413_v59  ;;  %v2508_v4 = vmax.f32 %v2252_v61, 0.0  ;;  %v2273_v5 = vadd.f32 %v5877_v40, %v4761_v2  ;;  %v1816_v7 = vpop.f32.mrf.mxu0  ;;  %v2264_v43 = vpop.f32.mrf.mxu1 }
 0x1ae   : > { %3519 = vst.msk [vmem:[%s5254_s8 + $0x19c] sm:$0xf] %vm3415_vm3, %v4304_v63  ;;  %v4302_v8 = vpack.c.bf16 %v2396_v0, %v2396_v0  ;;  %v2401_v9 = vmax.f32 %v1825_v1, 0.0  ;;  %v1817_v10 = vadd.f32 %v5877_v40, %v1816_v7  ;;  %3631 = vst.msk [vmem:[%s5254_s8 + $0x35c] sm:$0xf] %vm3415_vm3, %v4416_v3  ;;  %v2265_v13 = vadd.f32 %v5877_v40, %v2264_v43 }
 0x1af   : > { %v4414_v11 = vpack.c.bf16 %v2508_v4, %v2508_v4  ;;  %v2513_v12 = vmax.f32 %v2273_v5, 0.0  ;;  %v4650_v14 = vpop.f32.mrf.mxu0  ;;  %v4762_v18 = vpop.f32.mrf.mxu1 }
 0x1b0   : > { %3517 = vst.msk [vmem:[%s5254_s8 + $0x194] sm:$0xf] %vm3415_vm3, %v4302_v8  ;;  %v4307_v15 = vpack.c.bf16 %v2401_v9, %v2401_v9  ;;  %v2399_v16 = vmax.f32 %v1817_v10, 0.0  ;;  %v1828_v17 = vadd.f32 %v5877_v40, %v4650_v14  ;;  %v2511_v20 = vmax.f32 %v2265_v13, 0.0 }
 0x1b1   : > { %3629 = vst.msk [vmem:[%s5254_s8 + $0x354] sm:$0xf] %vm3415_vm3, %v4414_v11  ;;  %v4419_v19 = vpack.c.bf16 %v2513_v12, %v2513_v12  ;;  %v2276_v21 = vadd.f32 %v5877_v40, %v4762_v18  ;;  %v1819_v22 = vpop.f32.mrf.mxu0  ;;  %v2267_v26 = vpop.f32.mrf.mxu1 }
 0x1b2   : > { %3522 = vst.msk [vmem:[%s5254_s8 + $0x1a8] sm:$0xf] %vm3415_vm3, %v4307_v15  ;;  %v4305_v23 = vpack.c.bf16 %v2399_v16, %v2399_v16  ;;  %v2402_v24 = vmax.f32 %v1828_v17, 0.0  ;;  %v1820_v25 = vadd.f32 %v5877_v40, %v1819_v22  ;;  %v4417_v27 = vpack.c.bf16 %v2511_v20, %v2511_v20 }
 0x1b3   : > { %3634 = vst.msk [vmem:[%s5254_s8 + $0x368] sm:$0xf] %vm3415_vm3, %v4419_v19  ;;  %v2514_v28 = vmax.f32 %v2276_v21, 0.0  ;;  %v2268_v29 = vadd.f32 %v5877_v40, %v2267_v26  ;;  %v4653_v30 = vpop.f32.mrf.mxu0  ;;  %v4765_v34 = vpop.f32.mrf.mxu1 }
 0x1b4   : > { %3520 = vst.msk [vmem:[%s5254_s8 + $0x1a0] sm:$0xf] %vm3415_vm3, %v4305_v23  ;;  %v4308_v31 = vpack.c.bf16 %v2402_v24, %v2402_v24  ;;  %v2400_v32 = vmax.f32 %v1820_v25, 0.0  ;;  %v1841_v33 = vadd.f32 %v5877_v40, %v4653_v30  ;;  %3632 = vst.msk [vmem:[%s5254_s8 + $0x360] sm:$0xf] %vm3415_vm3, %v4417_v27  ;;  %v2289_v37 = vadd.f32 %v5877_v40, %v4765_v34 }
 0x1b5   : > { %v4420_v35 = vpack.c.bf16 %v2514_v28, %v2514_v28  ;;  %v2512_v36 = vmax.f32 %v2268_v29, 0.0  ;;  %v1832_v38 = vpop.f32.mrf.mxu0  ;;  %v2280_v44 = vpop.f32.mrf.mxu1 }
 0x1b6   : > { %3523 = vst.msk [vmem:[%s5254_s8 + $0x1ac] sm:$0xf] %vm3415_vm3, %v4308_v31  ;;  %v4306_v39 = vpack.c.bf16 %v2400_v32, %v2400_v32  ;;  %v2405_v41 = vmax.f32 %v1841_v33, 0.0  ;;  %v1833_v42 = vadd.f32 %v5877_v40, %v1832_v38  ;;  %v2517_v6 = vmax.f32 %v2289_v37, 0.0 }
 0x1b7   : > { %3635 = vst.msk [vmem:[%s5254_s8 + $0x36c] sm:$0xf] %vm3415_vm3, %v4420_v35  ;;  %v4418_v45 = vpack.c.bf16 %v2512_v36, %v2512_v36  ;;  %v2281_v46 = vadd.f32 %v5877_v40, %v2280_v44  ;;  %v4654_v47 = vpop.f32.mrf.mxu0  ;;  %v4766_v51 = vpop.f32.mrf.mxu1 }
 0x1b8   : > { %3521 = vst.msk [vmem:[%s5254_s8 + $0x1a4] sm:$0xf] %vm3415_vm3, %v4306_v39  ;;  %v4311_v48 = vpack.c.bf16 %v2405_v41, %v2405_v41  ;;  %v2403_v49 = vmax.f32 %v1833_v42, 0.0  ;;  %v1844_v50 = vadd.f32 %v5877_v40, %v4654_v47  ;;  %v4423_v52 = vpack.c.bf16 %v2517_v6, %v2517_v6 }
 0x1b9   : > { %3633 = vst.msk [vmem:[%s5254_s8 + $0x364] sm:$0xf] %vm3415_vm3, %v4418_v45  ;;  %v2515_v53 = vmax.f32 %v2281_v46, 0.0  ;;  %v2292_v54 = vadd.f32 %v5877_v40, %v4766_v51  ;;  %v1835_v55 = vpop.f32.mrf.mxu0  ;;  %v2283_v59 = vpop.f32.mrf.mxu1 }
 0x1ba   : > { %3526 = vst.msk [vmem:[%s5254_s8 + $0x1b8] sm:$0xf] %vm3415_vm3, %v4311_v48  ;;  %v4309_v56 = vpack.c.bf16 %v2403_v49, %v2403_v49  ;;  %v2406_v57 = vmax.f32 %v1844_v50, 0.0  ;;  %v1836_v58 = vadd.f32 %v5877_v40, %v1835_v55  ;;  %3638 = vst.msk [vmem:[%s5254_s8 + $0x378] sm:$0xf] %vm3415_vm3, %v4423_v52  ;;  %v2284_v62 = vadd.f32 %v5877_v40, %v2283_v59 }
 0x1bb   : > { %v4421_v60 = vpack.c.bf16 %v2515_v53, %v2515_v53  ;;  %v2518_v61 = vmax.f32 %v2292_v54, 0.0 }
 0x1bc   : > { %3524 = vst.msk [vmem:[%s5254_s8 + $0x1b0] sm:$0xf] %vm3415_vm3, %v4309_v56  ;;  %v4312_v63 = vpack.c.bf16 %v2406_v57, %v2406_v57  ;;  %v2404_v0 = vmax.f32 %v1836_v58, 0.0  ;;  %v2516_v2 = vmax.f32 %v2284_v62, 0.0 }
 0x1bd   : > { %3636 = vst.msk [vmem:[%s5254_s8 + $0x370] sm:$0xf] %vm3415_vm3, %v4421_v60  ;;  %v4424_v1 = vpack.c.bf16 %v2518_v61, %v2518_v61 }
 0x1be   : > { %3527 = vst.msk [vmem:[%s5254_s8 + $0x1bc] sm:$0xf] %vm3415_vm3, %v4312_v63  ;;  %v4310_v3 = vpack.c.bf16 %v2404_v0, %v2404_v0  ;;  %v4422_v4 = vpack.c.bf16 %v2516_v2, %v2516_v2 }
 0x1bf   : > { %3639 = vst.msk [vmem:[%s5254_s8 + $0x37c] sm:$0xf] %vm3415_vm3, %v4424_v1 }
 0x1c0   : > { %3525 = vst.msk [vmem:[%s5254_s8 + $0x1b4] sm:$0xf] %vm3415_vm3, %v4310_v3  ;;  %3637 = vst.msk [vmem:[%s5254_s8 + $0x374] sm:$0xf] %vm3415_vm3, %v4422_v4 }
 0x1c1 PF: > { %s13_s16 = sadd.s32 1, %s4968_s16   ;;  %s5974_s12 = smov %s4960_s14 }
 0x1c2   : > { %p10_p7 = scmp.ge.s32.totalorder %s13_s16, 58   ;;  %s5975_s13 = smov %s4964_s15 }
 0x1c3   : > { %s5976_s14 = smov %s5979_s17  ;;  %s5977_s15 = smov %s5983_s18 }
 0x1c4   :  { %12 = sbr.rel (!%p10_p7) target bundleno = 3 (0x3), region = 62 }

</bundles_post_ra>
